<compile_context>
chip_gen: v6e
topology: v6e:2x2x1
jax: 0.10.0
libtpu: 0.0.40
codegen_flags: <defaults>
</compile_context>

<pallas_src>
import functools

import jax
import jax.numpy as jnp
from jax.experimental import pallas as pl
from jax.experimental.pallas import tpu as pltpu


def _mlp_kernel(x_ref,           # [TILE_B, F]          (natural input tile)
                w1_ref, b1_ref,  # [512, F] bf16, [512, 1] f32
                w2_ref, b2_ref,  # [256, 512] bf16, [256, 1] f32
                w3_ref, b3_ref,  # [num_dcs, 256] bf16, [num_dcs, 1] f32
                o_ref):          # [num_dcs, TILE_B] f32
    x = x_ref[...].astype(jnp.float32)                       # matches torch `x.float()`

    # F.normalize: x / max(||x||_2, 1e-12)  ==  x * rsqrt(max(sumsq, 1e-24))
    sumsq = jnp.sum(x * x, axis=1, keepdims=True)             # [TILE_B, 1]
    xn = x * jax.lax.rsqrt(jnp.maximum(sumsq, 1e-24))
    xn_b = xn.astype(jnp.bfloat16)

    # Layer 1: W1 @ xn^T via dot_general contracting the feature dims (trans_b pattern)
    # -> [512, TILE_B], batch on lanes from here on.
    h = jax.lax.dot_general(
        w1_ref[...], xn_b,
        dimension_numbers=(((1,), (1,)), ((), ())),
        preferred_element_type=jnp.float32) + b1_ref[...]
    h = jnp.tanh(h).astype(jnp.bfloat16)                      # [512, TILE_B]

    h = jnp.dot(w2_ref[...], h, preferred_element_type=jnp.float32) + b2_ref[...]
    h = jnp.tanh(h).astype(jnp.bfloat16)                      # [256, TILE_B]

    out = jnp.dot(w3_ref[...], h, preferred_element_type=jnp.float32) + b3_ref[...]
    o_ref[...] = out.astype(o_ref.dtype)                      # [num_dcs, TILE_B]


@functools.partial(jax.jit, static_argnames=("tile_b",))
def mask_plus_consumption_mlp_forward(x, params, *, tile_b=1024):
    """x: [B, F] with F = num_dcs + num_dcs*num_commodities. Returns [B, num_dcs]."""
    (w1, b1), (w2, b2), (w3, b3) = params
    batch, feat = x.shape
    h1, h2 = w1.shape[0], w2.shape[0]
    num_dcs = w3.shape[0]

    # Batch tile: multiple of 128 (lane axis).  Cap it so the batch grid has >= 2 steps
    # when the batch allows it (keeps both v7x TensorCores busy; harmless elsewhere).
    tile_b = max(128, (int(tile_b) // 128) * 128)
    b_pad128 = ((batch + 127) // 128) * 128
    if b_pad128 >= 256:
        tile_b = min(tile_b, max(128, (b_pad128 // 2 // 128) * 128))
    b_pad = ((batch + tile_b - 1) // tile_b) * tile_b

    if b_pad != batch:
        x = jnp.pad(x, ((0, b_pad - batch), (0, 0)))          # zero rows -> zero output, discarded

    # bf16 weights for the MXU; biases stay f32 (added to the f32 accumulator).
    w1b = w1.astype(jnp.bfloat16)
    w2b = w2.astype(jnp.bfloat16)
    w3b = w3.astype(jnp.bfloat16)

    grid = (b_pad // tile_b,)

    flops = 2 * batch * (feat * h1 + h1 * h2 + h2 * num_dcs) + 3 * batch * feat
    transcendentals = batch * (h1 + h2 + 1)
    bytes_accessed = (4 * (batch * feat + batch * num_dcs + b1.size + b2.size + b3.size)
                      + 2 * (w1.size + w2.size + w3.size))

    const = lambda i: (0, 0)   # resident full-array blocks (weights / biases)

    out_t = pl.pallas_call(
        _mlp_kernel,
        out_shape=jax.ShapeDtypeStruct((num_dcs, b_pad), jnp.float32),
        grid=grid,
        in_specs=[
            pl.BlockSpec((tile_b, feat), lambda i: (i, 0)),   # x: tiled over batch
            pl.BlockSpec(w1b.shape, const),
            pl.BlockSpec(b1.shape, const),
            pl.BlockSpec(w2b.shape, const),
            pl.BlockSpec(b2.shape, const),
            pl.BlockSpec(w3b.shape, const),
            pl.BlockSpec(b3.shape, const),
        ],
        out_specs=pl.BlockSpec((num_dcs, tile_b), lambda i: (0, i)),
        compiler_params=pltpu.CompilerParams(
            dimension_semantics=("parallel",),                # shard batch tiles across TCs (v7x)
        ),
        cost_estimate=pl.CostEstimate(
            flops=flops,
            transcendentals=transcendentals,
            bytes_accessed=bytes_accessed,
        ),
    )(x, w1b, b1, w2b, b2, w3b, b3)

    return out_t[:, :batch].T                                 # tiny transpose back to [B, num_dcs]


def init_params(key, num_dcs, num_commodities):
    """Deterministic init mimicking torch.nn.Linear defaults; NoisyLinear noise folded in.

    Weights are [out, in] (torch-native) and biases [out, 1] (lane broadcast in kernel).
    """
    in_size = num_dcs + num_dcs * num_commodities
    dims = [in_size, 512, 256, num_dcs]
    params = []
    for i in range(3):
        fan_in, fan_out = dims[i], dims[i + 1]
        key, kw, kb = jax.random.split(key, 3)
        bound = 1.0 / (fan_in ** 0.5)
        w = jax.random.uniform(kw, (fan_out, fan_in), jnp.float32, -bound, bound)
        b = jax.random.uniform(kb, (fan_out, 1), jnp.float32, -bound, bound)
        params.append((w, b))
    return params


if __name__ == "__main__":
    num_customers = 4        # unused by the forward shapes (kept for parity with the module)
    num_dcs = 4
    num_commodities = 3
    batch = 256              # exercises the batch grid (2 tiles of 128)

    key = jax.random.PRNGKey(0)
    key, kx = jax.random.split(key)

    feat = num_dcs + num_dcs * num_commodities   # mask + inventory-after-current-order
    x = jax.random.normal(kx, (batch, feat), jnp.float32)

    params = init_params(key, num_dcs, num_commodities)

    out = mask_plus_consumption_mlp_forward(x, params)
    out = jax.block_until_ready(out)

    # Pure-JAX f32 reference (standard [B, F] layout, high-precision matmuls).
    def ref(x, params):
        xf = x.astype(jnp.float32)
        norm = jnp.sqrt(jnp.sum(xf * xf, axis=1, keepdims=True))
        h = xf / jnp.maximum(norm, 1e-12)
        for i, (w, b) in enumerate(params):
            h = jnp.dot(h, w.T, precision=jax.lax.Precision.HIGHEST) + b.reshape(1, -1)
            if i < 2:
                h = jnp.tanh(h)
        return h

    expected = ref(x, params)
    assert out.shape == (batch, num_dcs)
    # bf16 matmul operands -> relaxed tolerance vs the f32 reference.
    assert jnp.allclose(out, expected, atol=2e-2, rtol=2e-2), (
        float(jnp.max(jnp.abs(out - expected))))

    print("KERNEL_OK")
</pallas_src>

<mosaic_0001>
module attributes {stable_mosaic.version = 11 : i64} {
  func.func @_mlp_kernel(%arg0: i32, %arg1: memref<128x16xf32, #tpu.memory_space<vmem>>, %arg2: memref<512x16xbf16, #tpu.memory_space<vmem>>, %arg3: memref<512x1xf32, #tpu.memory_space<vmem>>, %arg4: memref<256x512xbf16, #tpu.memory_space<vmem>>, %arg5: memref<256x1xf32, #tpu.memory_space<vmem>>, %arg6: memref<4x256xbf16, #tpu.memory_space<vmem>>, %arg7: memref<4x1xf32, #tpu.memory_space<vmem>>, %arg8: memref<4x128xf32, #tpu.memory_space<vmem>>) attributes {dimension_semantics = [#tpu.dimension_semantics<parallel>], iteration_bounds = array<i64: 2>, scalar_prefetch = 0 : i64, scratch_operands = 0 : i64, tpu.core_type = #tpu.core_type<tc>, window_params = [{transform_indices = @transform_0, window_bounds = array<i64: 128, 16>}, {pipeline_mode = #tpu.pipeline_mode<synchronous>, transform_indices = @transform_1, window_bounds = array<i64: 512, 16>}, {pipeline_mode = #tpu.pipeline_mode<synchronous>, transform_indices = @transform_2, window_bounds = array<i64: 512, 1>}, {pipeline_mode = #tpu.pipeline_mode<synchronous>, transform_indices = @transform_3, window_bounds = array<i64: 256, 512>}, {pipeline_mode = #tpu.pipeline_mode<synchronous>, transform_indices = @transform_4, window_bounds = array<i64: 256, 1>}, {pipeline_mode = #tpu.pipeline_mode<synchronous>, transform_indices = @transform_5, window_bounds = array<i64: 4, 256>}, {pipeline_mode = #tpu.pipeline_mode<synchronous>, transform_indices = @transform_6, window_bounds = array<i64: 4, 1>}, {transform_indices = @transform_7, window_bounds = array<i64: 4, 128>}]} {
    %c0 = arith.constant 0 : index
    %c0_0 = arith.constant 0 : index
    %0 = vector.load %arg1[%c0, %c0_0] : memref<128x16xf32, #tpu.memory_space<vmem>>, vector<128x16xf32>
    %1 = arith.mulf %0, %0 : vector<128x16xf32>
    %cst = arith.constant dense<0.000000e+00> : vector<128xf32>
    %2 = vector.multi_reduction <add>, %1, %cst [1] : vector<128x16xf32> to vector<128xf32>
    %3 = vector.shape_cast %2 : vector<128xf32> to vector<128x1xf32>
    %cst_1 = arith.constant 1.000000e-24 : f32
    %4 = vector.broadcast %cst_1 : f32 to vector<128x1xf32>
    %5 = arith.maximumf %3, %4 : vector<128x1xf32>
    %6 = math.rsqrt %5 : vector<128x1xf32>
    %7 = vector.broadcast %6 : vector<128x1xf32> to vector<128x16xf32>
    %8 = arith.mulf %0, %7 : vector<128x16xf32>
    %9 = arith.truncf %8 : vector<128x16xf32> to vector<128x16xbf16>
    %c0_2 = arith.constant 0 : index
    %c0_3 = arith.constant 0 : index
    %10 = vector.load %arg2[%c0_2, %c0_3] : memref<512x16xbf16, #tpu.memory_space<vmem>>, vector<512x16xbf16>
    %cst_4 = arith.constant dense<0.000000e+00> : vector<512x128xf32>
    %11 = tpu.matmul %10, %9, %cst_4 {dimension_numbers = #tpu.dot_dimension_numbers<[1], [1], [0], [0], [0, 0, 1, 0], [], []>} : vector<512x16xbf16>, vector<128x16xbf16>, vector<512x128xf32> -> vector<512x128xf32>
    %c0_5 = arith.constant 0 : index
    %c0_6 = arith.constant 0 : index
    %12 = vector.load %arg3[%c0_5, %c0_6] : memref<512x1xf32, #tpu.memory_space<vmem>>, vector<512x1xf32>
    %13 = vector.broadcast %12 : vector<512x1xf32> to vector<512x128xf32>
    %14 = arith.addf %11, %13 : vector<512x128xf32>
    %15 = math.tanh %14 : vector<512x128xf32>
    %16 = arith.truncf %15 : vector<512x128xf32> to vector<512x128xbf16>
    %c0_7 = arith.constant 0 : index
    %c0_8 = arith.constant 0 : index
    %17 = vector.load %arg4[%c0_7, %c0_8] : memref<256x512xbf16, #tpu.memory_space<vmem>>, vector<256x512xbf16>
    %cst_9 = arith.constant dense<0.000000e+00> : vector<256x128xf32>
    %18 = tpu.matmul %17, %16, %cst_9 {dimension_numbers = #tpu.dot_dimension_numbers<[1], [0], [0], [1], [0, 0, 1, 1], [], []>} : vector<256x512xbf16>, vector<512x128xbf16>, vector<256x128xf32> -> vector<256x128xf32>
    %c0_10 = arith.constant 0 : index
    %c0_11 = arith.constant 0 : index
    %19 = vector.load %arg5[%c0_10, %c0_11] : memref<256x1xf32, #tpu.memory_space<vmem>>, vector<256x1xf32>
    %20 = vector.broadcast %19 : vector<256x1xf32> to vector<256x128xf32>
    %21 = arith.addf %18, %20 : vector<256x128xf32>
    %22 = math.tanh %21 : vector<256x128xf32>
    %23 = arith.truncf %22 : vector<256x128xf32> to vector<256x128xbf16>
    %c0_12 = arith.constant 0 : index
    %c0_13 = arith.constant 0 : index
    %24 = vector.load %arg6[%c0_12, %c0_13] : memref<4x256xbf16, #tpu.memory_space<vmem>>, vector<4x256xbf16>
    %cst_14 = arith.constant dense<0.000000e+00> : vector<4x128xf32>
    %25 = tpu.matmul %24, %23, %cst_14 {dimension_numbers = #tpu.dot_dimension_numbers<[1], [0], [0], [1], [0, 0, 1, 1], [], []>} : vector<4x256xbf16>, vector<256x128xbf16>, vector<4x128xf32> -> vector<4x128xf32>
    %c0_15 = arith.constant 0 : index
    %c0_16 = arith.constant 0 : index
    %26 = vector.load %arg7[%c0_15, %c0_16] : memref<4x1xf32, #tpu.memory_space<vmem>>, vector<4x1xf32>
    %27 = vector.broadcast %26 : vector<4x1xf32> to vector<4x128xf32>
    %28 = arith.addf %25, %27 : vector<4x128xf32>
    %c0_17 = arith.constant 0 : index
    %c0_18 = arith.constant 0 : index
    %29 = vector.load %arg8[%c0_17, %c0_18] : memref<4x128xf32, #tpu.memory_space<vmem>>, vector<4x128xf32>
    tpu.vector_store %arg8[%c0_17, %c0_18], %28 {strides = array<i32>} : memref<4x128xf32, #tpu.memory_space<vmem>>, vector<4x128xf32>,
    return
  }
  func.func @transform_0(%arg0: i32) -> (i32, i32) {
    %c0_i32 = arith.constant 0 : i32
    %c0_i32_0 = arith.constant 0 : i32
    return %arg0, %c0_i32 : i32, i32
  }
  func.func @transform_1(%arg0: i32) -> (i32, i32) {
    %c0_i32 = arith.constant 0 : i32
    %c0_i32_0 = arith.constant 0 : i32
    %c0_i32_1 = arith.constant 0 : i32
    return %c0_i32, %c0_i32_0 : i32, i32
  }
  func.func @transform_2(%arg0: i32) -> (i32, i32) {
    %c0_i32 = arith.constant 0 : i32
    %c0_i32_0 = arith.constant 0 : i32
    %c0_i32_1 = arith.constant 0 : i32
    return %c0_i32, %c0_i32_0 : i32, i32
  }
  func.func @transform_3(%arg0: i32) -> (i32, i32) {
    %c0_i32 = arith.constant 0 : i32
    %c0_i32_0 = arith.constant 0 : i32
    %c0_i32_1 = arith.constant 0 : i32
    return %c0_i32, %c0_i32_0 : i32, i32
  }
  func.func @transform_4(%arg0: i32) -> (i32, i32) {
    %c0_i32 = arith.constant 0 : i32
    %c0_i32_0 = arith.constant 0 : i32
    %c0_i32_1 = arith.constant 0 : i32
    return %c0_i32, %c0_i32_0 : i32, i32
  }
  func.func @transform_5(%arg0: i32) -> (i32, i32) {
    %c0_i32 = arith.constant 0 : i32
    %c0_i32_0 = arith.constant 0 : i32
    %c0_i32_1 = arith.constant 0 : i32
    return %c0_i32, %c0_i32_0 : i32, i32
  }
  func.func @transform_6(%arg0: i32) -> (i32, i32) {
    %c0_i32 = arith.constant 0 : i32
    %c0_i32_0 = arith.constant 0 : i32
    %c0_i32_1 = arith.constant 0 : i32
    return %c0_i32, %c0_i32_0 : i32, i32
  }
  func.func @transform_7(%arg0: i32) -> (i32, i32) {
    %c0_i32 = arith.constant 0 : i32
    %c0_i32_0 = arith.constant 0 : i32
    return %c0_i32, %arg0 : i32, i32
  }
}

</mosaic_0001>

<bundles_post_ra>
// kernel: mask_plus_consumption_mlp_forward.1
= control target key start
LH: loop header
LB: loop body
LE: loop exit
PB: predicated region body
PF: predicated region fallthrough
CT: control target
= control target key end

     0   :  { %12 = vsyncpa [#allocation3], 0  ;;  %s5012_s0 = inlined_call_operand.vmem [shape: f32[256,16], index: 0, kind: input, shape index: {}]   ;;  %s5013_s1 = inlined_call_operand.vmem [shape: bf16[512,16], index: 1, kind: input, shape index: {}]   ;;  %s5014_s2 = inlined_call_operand.vmem [shape: f32[512,1], index: 2, kind: input, shape index: {}]   ;;  %s5015_s3 = inlined_call_operand.vmem [shape: bf16[256,512], index: 3, kind: input, shape index: {}]   ;;  %s5016_s4 = inlined_call_operand.vmem [shape: f32[256,1], index: 4, kind: input, shape index: {}]   ;;  %s5017_s5 = inlined_call_operand.vmem [shape: bf16[4,256], index: 5, kind: input, shape index: {}]   ;;  %s5018_s6 = inlined_call_operand.vmem [shape: f32[4,1], index: 6, kind: input, shape index: {}]   ;;  %s5019_s7 = inlined_call_operand.hbm [shape: f32[4,256], index: 7, kind: output, shape index: {}]  }
   0x1   :  { %14 = vsyncpa [#allocation3 + $0x1], 0  ;;  %s3636_s24 = smov 0   ;;  %s3638_s25 = smov 0  }
   0x2   :  { %s3640_s26 = smov 0   ;;  %s3642_s27 = smov 0  }
   0x3 LB: > { %s3657_s28 = sadd.s32 4294967295, %s3592_s27   ;;  %s2608_s29 = sadd.s32 4294967294, %s3592_s27   ;;  %s3592_s27 = sphi %s3642_s27, %s5099_s27   ;;  %s3588_s26 = sphi %s3640_s26, %s5098_s26   ;;  %s3584_s25 = sphi %s3638_s25, %s5097_s25   ;;  %s3580_s24 = sphi %s3636_s24, %s5096_s24  }
   0x4   : > { %s3661_s30 = sadd.s32 1, %s3592_s27   ;;  %s179_s8 = sadd.s32 1, %s3588_s26 }
   0x5   : > { %s176_s9 = ssub.s32 %s3592_s27, %s3661_s30  ;;  %p189_p0 = scmp.ne.s32.totalorder %s3588_s26, %s3584_s25 }
   0x6   : > { %p177_p1 = scmp.eq.s32.totalorder %s176_s9, 0  ;;  %p190_p2 = scmp.eq.s32.totalorder %s3657_s28, 1 }
   0x7   : > { %p195_p3 = scmp.ne.s32.totalorder %s3584_s25, %s3580_s24  ;;  %p196_p4 = scmp.eq.s32.totalorder %s2608_s29, 1 }
   0x8   : > { %s3672_s10 = scalar_select %p177_p1, %s3588_s26, %s179_s8  }
   0x9   : > { %p3674_p5 = por %p190_p2, %p189_p0  ;;  %p3678_p6 = por %p196_p4, %p195_p3 }
   0xa   : > { %p2611_p7 = scmp.ge.s32.totalorder %s3592_s27, 1  ;;  %p241_p8 = scmp.lt.s32.totalorder %s3592_s27, 3 }
   0xc   : > { %p242_p9 = pnand %p2611_p7, %p241_p8 }
   0xe   : > { %245 = sbr.rel (%p242_p9) target bundleno = 1229 (0x4cd), region = 48 }
  0x13   : > { %s2613_s13 = sshll.u32 %s3657_s28, 4  ;;  %v3594_v0 = vmov 0   ;;  %vm312_vm0 = vcmask 130048   ;;  %v512_v49 = vld [vmem:[%s5014_s2 + $0xf8] sm:$0xff]  ;;  %v495_v50 = vld [vmem:[%s5014_s2 + $0x70] sm:$0xff]  ;;  %v509_v54 = vld [vmem:[%s5014_s2 + $0xe0] sm:$0xff] }
  0x14   : > { %p274_p10 = scmp.lt.s32.totalorder %s2613_s13, 31  ;;  %3179 = vset.pattern.permute.xlu1 %v3594_v0  ;;  %3178 = vset.pattern.permute.xlu0 %v3594_v0  ;;  %v511_v51 = vld [vmem:[%s5014_s2 + $0xf0] sm:$0xff]  ;;  %v496_v52 = vld [vmem:[%s5014_s2 + $0x78] sm:$0xff]  ;;  %v510_v56 = vld [vmem:[%s5014_s2 + $0xe8] sm:$0xff]  ;;  %s2745_s16 = sshll.u32 %s3657_s28, 6 }
  0x15   : > { %v508_v53 = vld [vmem:[%s5014_s2 + $0xd8] sm:$0xff]  ;;  %v506_v57 = vld [vmem:[%s5014_s2 + $0xc8] sm:$0xff]  ;;  %v493_v58 = vld [vmem:[%s5014_s2 + $0x60] sm:$0xff]  ;;  %s4977_s21 = scalar_lea.hbm %s5019_s7, %s2745_s16  ;;  %s3595_s28 = smov [#allocation2]  }
  0x16   : > { %s5101_s13 = smov (!%p274_p10, %s2613_s13), 31  ;;  %v492_v55 = vld [vmem:[%s5014_s2 + $0x58] sm:$0xff]  ;;  %v490_v59 = vld [vmem:[%s5014_s2 + $0x48] sm:$0xff]  ;;  %v507_v62 = vld [vmem:[%s5014_s2 + $0xd0] sm:$0xff]  ;;  %s3536_s29 = sshll.u32 %s3595_s28, 4  ;;  %s3537_s29 = int_to_ptr.vmem [resolvable:$false] %s3536_s29 }
  0x17   : > { %s2614_s14 = sshll.u32 %s5101_s13, 3  ;;  %v494_v60 = vld [vmem:[%s5014_s2 + $0x68] sm:$0xff]  ;;  %v504_v61 = vld [vmem:[%s5014_s2 + $0xb8] sm:$0xff]  ;;  %v491_v0 = vld [vmem:[%s5014_s2 + $0x50] sm:$0xff]  ;;  %s3538_s8 = scalar_lea.vmem %s3537_s29, 128 }
  0x18   : > { %s3688_s17 = scalar_lea.vmem %s5012_s0, %s2614_s14  ;;  %v488_v63 = vld [vmem:[%s5014_s2 + $0x38] sm:$0xff]  ;;  %s270_s14 = sand.u32 1, %s3584_s25  }
  0x19   : > { %v3691_v1 = vld [vmem:[%s3688_s17 + $0x70] sm:$0xff]  ;;  %v3694_v2 = vld [vmem:[%s3688_s17 + $0x78] sm:$0xff]  ;;  %v3697_v3 = vld [vmem:[%s3688_s17 + $0x60] sm:$0xff]  ;;  %s2612_s15 = sshll.u32 %s270_s14, 2  ;;  %s2536_s22 = scalar_lea.sflag [#allocation3], %s270_s14 }
  0x1a   : > { %v310_v4 = vmul.f32 %v3691_v1, %v3691_v1  ;;  %v311_v5 = vmul.f32 %v3694_v2, %v3694_v2  ;;  %v308_v6 = vmul.f32 %v3697_v3, %v3697_v3  ;;  %v3706_v7 = vld [vmem:[%s3688_s17 + $0x68] sm:$0xff]  ;;  %v3709_v8 = vld [vmem:[%s3688_s17 + $0x58] sm:$0xff]  ;;  %v3714_v10 = vld [vmem:[%s3688_s17 + $0x50] sm:$0xff] }
  0x1b   : > { %v309_v9 = vmul.f32 %v3706_v7, %v3706_v7  ;;  %v307_v13 = vmul.f32 %v3709_v8, %v3709_v8  ;;  %v3721_v14 = vld [vmem:[%s3688_s17 + $0x48] sm:$0xff]  ;;  %v3724_v15 = vld [vmem:[%s3688_s17 + $0x40] sm:$0xff]  ;;  %v306_v18 = vmul.f32 %v3714_v10, %v3714_v10  ;;  %v3735_v21 = vld [vmem:[%s3688_s17 + $0x38] sm:$0xff] }
  0x1c   : > { %v355_v11 = vsel %vm312_vm0, %v310_v4, 0.0  ;;  %v349_v12 = vsel %vm312_vm0, %v308_v6, 0.0  ;;  %v358_v16 = vsel %vm312_vm0, %v311_v5, 0.0  ;;  %v305_v19 = vmul.f32 %v3721_v14, %v3721_v14  ;;  %v3739_v23 = vld [vmem:[%s3688_s17 + $0x30] sm:$0xff]  ;;  %v3743_v25 = vld [vmem:[%s3688_s17 + $0x28] sm:$0xff]  ;;  %v3746_v26 = vld [vmem:[%s3688_s17 + $0x20] sm:$0xff] }
  0x1d   : > { %356 = vadd.xlane.f32.xlu0 %v355_v11  ;;  %350 = vadd.xlane.f32.xlu1 %v349_v12  ;;  %v352_v17 = vsel %vm312_vm0, %v309_v9, 0.0  ;;  %v304_v20 = vmul.f32 %v3724_v15, %v3724_v15  ;;  %v346_v22 = vsel %vm312_vm0, %v307_v13, 0.0  ;;  %v343_v24 = vsel %vm312_vm0, %v306_v18, 0.0  ;;  %v3755_v31 = vld [vmem:[%s3688_s17 + $0x18] sm:$0xff]  ;;  %v3758_v32 = vld [vmem:[%s3688_s17 + $0x10] sm:$0xff]  ;;  %v3773_v41 = vld [vmem:[%s3688_s17 + $0x8] sm:$0xff] }
  0x1e   : > { %v340_v27 = vsel %vm312_vm0, %v305_v19, 0.0  ;;  %v303_v29 = vmul.f32 %v3735_v21, %v3735_v21  ;;  %v302_v30 = vmul.f32 %v3739_v23, %v3739_v23  ;;  %v301_v35 = vmul.f32 %v3743_v25, %v3743_v25  ;;  %v3776_v42 = vld [vmem:[%s3688_s17] sm:$0xff]  ;;  %v502_v4 = vld [vmem:[%s5014_s2 + $0xa8] sm:$0xff]  ;;  %v500_v11 = vld [vmem:[%s5014_s2 + $0x98] sm:$0xff]  ;;  %s272_s17 = scalar_lea.vmem [#allocation2], %s2612_s15 }
  0x1f   : > { %v337_v28 = vsel %vm312_vm0, %v304_v20, 0.0  ;;  %v300_v36 = vmul.f32 %v3746_v26, %v3746_v26  ;;  %v299_v39 = vmul.f32 %v3755_v31, %v3755_v31  ;;  %v298_v40 = vmul.f32 %v3758_v32, %v3758_v32  ;;  %v505_v5 = vld [vmem:[%s5014_s2 + $0xc0] sm:$0xff]  ;;  %v486_v6 = vld [vmem:[%s5014_s2 + $0x28] sm:$0xff]  ;;  %v503_v12 = vld [vmem:[%s5014_s2 + $0xb0] sm:$0xff]  ;;  %s2549_s18 = sshll.u32 %s272_s17, 4  ;;  %s2550_s18 = int_to_ptr.vmem [resolvable:$true] %s2549_s18 }
  0x20   : > { %v334_v33 = vsel %vm312_vm0, %v303_v29, 0.0  ;;  %v331_v34 = vsel %vm312_vm0, %v302_v30, 0.0  ;;  %v328_v37 = vsel %vm312_vm0, %v301_v35, 0.0  ;;  %v297_v45 = vmul.f32 %v3773_v41, %v3773_v41  ;;  %v489_v9 = vld [vmem:[%s5014_s2 + $0x40] sm:$0xff]  ;;  %v484_v13 = vld [vmem:[%s5014_s2 + $0x18] sm:$0xff]  ;;  %v498_v18 = vld [vmem:[%s5014_s2 + $0x88] sm:$0xff]  ;;  %p3539_p0 = scmp.lt.s32.totalorder %s2550_s18, %s3537_s29 }
  0x21   : > { %359 = vadd.xlane.f32.xlu0 %v358_v16  ;;  %353 = vadd.xlane.f32.xlu1 %v352_v17  ;;  %v325_v38 = vsel %vm312_vm0, %v300_v36, 0.0  ;;  %v322_v43 = vsel %vm312_vm0, %v299_v39, 0.0  ;;  %v319_v44 = vsel %vm312_vm0, %v298_v40, 0.0  ;;  %v296_v46 = vmul.f32 %v3776_v42, %v3776_v42  ;;  %v487_v16 = vld [vmem:[%s5014_s2 + $0x30] sm:$0xff]  ;;  %v3180_v17 = vld [vmem:[%s5013_s1] sm:$0xff]   ;;  %v482_v20 = vld [vmem:[%s5014_s2 + $0x8] sm:$0xff] }
  0x22   : > { %v316_v47 = vsel %vm312_vm0, %v297_v45, 0.0  ;;  %3050 = vmatprep.mubr.msk.bf16.mxu0 %vm312_vm0, %v3180_v17  ;;  %v501_v19 = vld [vmem:[%s5014_s2 + $0xa0] sm:$0xff]  ;;  %v483_v29 = vld [vmem:[%s5014_s2 + $0x10] sm:$0xff]  ;;  %v542_v30 = vld [vmem:[%s5014_s2 + $0x1e8] sm:$0xff]  ;;  %s3532_s23 = scalar_lea.vmem %s2550_s18, 64 }
  0x23   : > { %v313_v48 = vsel %vm312_vm0, %v296_v46, 0.0  ;;  %v481_v35 = vld [vmem:[%s5014_s2] sm:$0xff]  ;;  %v540_v36 = vld [vmem:[%s5014_s2 + $0x1d8] sm:$0xff]  ;;  %v527_v39 = vld [vmem:[%s5014_s2 + $0x170] sm:$0xff]  ;;  %p3533_p11 = scmp.ne.s32.totalorder %s2550_s18, %s3532_s23  ;;  %p3540_p1 = scmp.lt.s32.totalorder %s3538_s8, %s3532_s23 }
  0x24   : > { %v538_v40 = vld [vmem:[%s5014_s2 + $0x1c8] sm:$0xff]  ;;  %v525_v45 = vld [vmem:[%s5014_s2 + $0x160] sm:$0xff]  ;;  %v536_v46 = vld [vmem:[%s5014_s2 + $0x1b8] sm:$0xff] }
  0x25   : > { %347 = vadd.xlane.f32.xlu1 %v346_v22  ;;  %344 = vadd.xlane.f32.xlu0 %v343_v24  ;;  %v485_v22 = vld [vmem:[%s5014_s2 + $0x20] sm:$0xff]  ;;  %v544_v24 = vld [vmem:[%s5014_s2 + $0x1f8] sm:$0xff]  ;;  %p3534_p12 = pnand %p3533_p11, %p3674_p5  ;;  %p3541_p2 = por %p3540_p1, %p3539_p0 }
  0x27   : > { %p3535_p13 = pneg %p3534_p12 }
  0x29   : > { %341 = vadd.xlane.f32.xlu1 %v340_v27  ;;  %338 = vadd.xlane.f32.xlu0 %v337_v28  ;;  %v499_v27 = vld [vmem:[%s5014_s2 + $0x90] sm:$0xff]  ;;  %v528_v28 = vld [vmem:[%s5014_s2 + $0x178] sm:$0xff]  ;;  %p3542_p3 = pnand %p3541_p2, %p3535_p13 }
  0x2d   : > { %335 = vadd.xlane.f32.xlu1 %v334_v33  ;;  %332 = vadd.xlane.f32.xlu0 %v331_v34  ;;  %v497_v33 = vld [vmem:[%s5014_s2 + $0x80] sm:$0xff]  ;;  %v526_v34 = vld [vmem:[%s5014_s2 + $0x168] sm:$0xff] }
  0x31   : > { %329 = vadd.xlane.f32.xlu1 %v328_v37  ;;  %326 = vadd.xlane.f32.xlu0 %v325_v38  ;;  %v543_v37 = vld [vmem:[%s5014_s2 + $0x1f0] sm:$0xff]  ;;  %v524_v38 = vld [vmem:[%s5014_s2 + $0x158] sm:$0xff] }
  0x35   : > { %323 = vadd.xlane.f32.xlu1 %v322_v43  ;;  %320 = vadd.xlane.f32.xlu0 %v319_v44  ;;  %v541_v43 = vld [vmem:[%s5014_s2 + $0x1e0] sm:$0xff]  ;;  %v522_v44 = vld [vmem:[%s5014_s2 + $0x148] sm:$0xff] }
  0x39   : > { %317 = vadd.xlane.f32.xlu1 %v316_v47  ;;  %314 = vadd.xlane.f32.xlu0 %v313_v48  ;;  %v539_v47 = vld [vmem:[%s5014_s2 + $0x1d0] sm:$0xff]  ;;  %v520_v48 = vld [vmem:[%s5014_s2 + $0x138] sm:$0xff] }
  0x4a   : > { %702 = vperm.xlu1 %3179, %v512_v49  }
  0x4e   : > { %617 = vperm.xlu1 %3179, %v495_v50  }
  0x4f   : > { %697 = vperm.xlu0 %3178, %v511_v51  }
  0x52   : > { %622 = vperm.xlu1 %3179, %v496_v52  }
  0x53   : > { %682 = vperm.xlu0 %3178, %v508_v53   ;;  %v523_v53 = vld [vmem:[%s5014_s2 + $0x150] sm:$0xff] }
  0x56   : > { %687 = vperm.xlu1 %3179, %v509_v54   ;;  %v534_v54 = vld [vmem:[%s5014_s2 + $0x1a8] sm:$0xff] }
  0x57   : > { %602 = vperm.xlu0 %3178, %v492_v55  }
  0x5a   : > { %692 = vperm.xlu1 %3179, %v510_v56  }
  0x5b   : > { %672 = vperm.xlu0 %3178, %v506_v57  }
  0x5e   : > { %607 = vperm.xlu1 %3179, %v493_v58  }
  0x5f   : > { %592 = vperm.xlu0 %3178, %v490_v59   ;;  %v537_v59 = vld [vmem:[%s5014_s2 + $0x1c0] sm:$0xff] }
  0x62   : > { %612 = vperm.xlu1 %3179, %v494_v60   ;;  %v518_v60 = vld [vmem:[%s5014_s2 + $0x128] sm:$0xff] }
  0x63   : > { %662 = vperm.xlu0 %3178, %v504_v61  }
  0x66   : > { %677 = vperm.xlu1 %3179, %v507_v62  }
  0x67   : > { %582 = vperm.xlu0 %3178, %v488_v63  }
  0x6a   : > { %597 = vperm.xlu1 %3179, %v491_v0  }
  0x6b   : > { %652 = vperm.xlu0 %3178, %v502_v4   ;;  %v521_v4 = vld [vmem:[%s5014_s2 + $0x140] sm:$0xff] }
  0x6e   : > { %667 = vperm.xlu1 %3179, %v505_v5   ;;  %v532_v5 = vld [vmem:[%s5014_s2 + $0x198] sm:$0xff] }
  0x6f   : > { %572 = vperm.xlu0 %3178, %v486_v6  }
  0x72   : > { %587 = vperm.xlu1 %3179, %v489_v9  }
  0x73   : > { %642 = vperm.xlu0 %3178, %v500_v11   ;;  %v535_v11 = vld [vmem:[%s5014_s2 + $0x1b0] sm:$0xff] }
  0x76   : > { %657 = vperm.xlu1 %3179, %v503_v12  }
  0x77   : > { %562 = vperm.xlu0 %3178, %v484_v13   ;;  %v516_v13 = vld [vmem:[%s5014_s2 + $0x118] sm:$0xff] }
  0x7a   : > { %577 = vperm.xlu1 %3179, %v487_v16  }
  0x7b   : > { %632 = vperm.xlu0 %3178, %v498_v18   ;;  %v519_v18 = vld [vmem:[%s5014_s2 + $0x130] sm:$0xff] }
  0x7e   : > { %647 = vperm.xlu1 %3179, %v501_v19  }
  0x7f   : > { %552 = vperm.xlu0 %3178, %v482_v20   ;;  %v530_v20 = vld [vmem:[%s5014_s2 + $0x188] sm:$0xff] }
  0x82   : > { %567 = vperm.xlu1 %3179, %v485_v22  }
  0x83   : > { %862 = vperm.xlu0 %3178, %v544_v24  }
  0x86   : > { %637 = vperm.xlu1 %3179, %v499_v27  }
  0x87   : > { %782 = vperm.xlu0 %3178, %v528_v28  }
  0x8a   : > { %557 = vperm.xlu1 %3179, %v483_v29  }
  0x8b   : > { %852 = vperm.xlu0 %3178, %v542_v30  }
  0x8e   : > { %627 = vperm.xlu1 %3179, %v497_v33  }
  0x8f   : > { %772 = vperm.xlu0 %3178, %v526_v34   ;;  %v533_v34 = vld [vmem:[%s5014_s2 + $0x1a0] sm:$0xff] }
  0x92   : > { %547 = vperm.xlu1 %3179, %v481_v35  }
  0x93   : > { %842 = vperm.xlu0 %3178, %v540_v36  }
  0x96   : > { %857 = vperm.xlu1 %3179, %v543_v37   ;;  %v514_v37 = vld [vmem:[%s5014_s2 + $0x108] sm:$0xff] }
  0x97   : > { %762 = vperm.xlu0 %3178, %v524_v38  }
  0x9a   : > { %777 = vperm.xlu1 %3179, %v527_v39  }
  0x9b   : > { %832 = vperm.xlu0 %3178, %v538_v40  }
  0x9e   : > { %847 = vperm.xlu1 %3179, %v541_v43   ;;  %v517_v43 = vld [vmem:[%s5014_s2 + $0x120] sm:$0xff] }
  0x9f   : > { %752 = vperm.xlu0 %3178, %v522_v44  }
  0xa2   : > { %767 = vperm.xlu1 %3179, %v525_v45  }
  0xa3   : > { %822 = vperm.xlu0 %3178, %v536_v46  }
  0xa6   : > { %v357_v49 = vpop.xlane.xlu0 %356  ;;  %v351_v50 = vpop.xlane.xlu1 %350  ;;  %837 = vperm.xlu1 %3179, %v539_v47  }
  0xa7   : > { %v375_v51 = vmax.f32 %v357_v49, 1e-24  ;;  %v373_v52 = vmax.f32 %v351_v50, 1e-24  ;;  %742 = vperm.xlu0 %3178, %v520_v48   ;;  %v531_v48 = vld [vmem:[%s5014_s2 + $0x190] sm:$0xff]  ;;  %v1609_v50 = vld [vmem:[%s5016_s4 + $0x78] sm:$0xff] }
  0xa9   : > { %3308 = vrsqrt.f32 %v373_v52 }
  0xaa   : > { %v360_v55 = vpop.xlane.xlu0 %359  ;;  %v354_v56 = vpop.xlane.xlu1 %353  ;;  %757 = vperm.xlu1 %3179, %v523_v53   ;;  %3310 = vrsqrt.f32 %v375_v51 }
  0xab   : > { %v376_v57 = vmax.f32 %v360_v55, 1e-24  ;;  %v374_v58 = vmax.f32 %v354_v56, 1e-24  ;;  %812 = vperm.xlu0 %3178, %v534_v54   ;;  %v1623_v55 = vld [vmem:[%s5016_s4 + $0xe8] sm:$0xff] }
  0xad   : > { %3312 = vrsqrt.f32 %v376_v57 }
  0xae   : > { %3314 = vrsqrt.f32 %v374_v58  ;;  %v348_v61 = vpop.xlane.xlu1 %347  ;;  %v345_v62 = vpop.xlane.xlu0 %344  ;;  %827 = vperm.xlu1 %3179, %v537_v59  }
  0xaf   : > { %v372_v63 = vmax.f32 %v348_v61, 1e-24  ;;  %v371_v0 = vmax.f32 %v345_v62, 1e-24  ;;  %732 = vperm.xlu0 %3178, %v518_v60   ;;  %v529_v60 = vld [vmem:[%s5014_s2 + $0x180] sm:$0xff]  ;;  %v1607_v62 = vld [vmem:[%s5016_s4 + $0x68] sm:$0xff] }
  0xb1   : > { %3316 = vrsqrt.f32 %v372_v63 }
  0xb2   : > { %3318 = vrsqrt.f32 %v371_v0  ;;  %v342_v6 = vpop.xlane.xlu1 %341  ;;  %v339_v9 = vpop.xlane.xlu0 %338  ;;  %747 = vperm.xlu1 %3179, %v521_v4  }
  0xb3   : > { %802 = vperm.xlu0 %3178, %v532_v5   ;;  %v370_v12 = vmax.f32 %v342_v6, 1e-24  ;;  %v369_v16 = vmax.f32 %v339_v9, 1e-24  ;;  %v1621_v6 = vld [vmem:[%s5016_s4 + $0xd8] sm:$0xff] }
  0xb5   : > { %3320 = vrsqrt.f32 %v370_v12 }
  0xb6   : > { %817 = vperm.xlu1 %3179, %v535_v11   ;;  %v3309_v17 = vpop.eup %3308  ;;  %3322 = vrsqrt.f32 %v369_v16  ;;  %v336_v22 = vpop.xlane.xlu1 %335  ;;  %v1624_v16 = vld [vmem:[%s5016_s4 + $0xf0] sm:$0xff] }
  0xb7   : > { %722 = vperm.xlu0 %3178, %v516_v13   ;;  %v3311_v19 = vpop.eup %3310  ;;  %v405_v27 = vmul.f32 %v3309_v17, %v3697_v3  ;;  %v333_v28 = vpop.xlane.xlu0 %332  ;;  %v368_v36 = vmax.f32 %v336_v22, 1e-24 }
  0xb8   : > { %v407_v30 = vmul.f32 %v3311_v19, %v3691_v1  ;;  %v367_v38 = vmax.f32 %v333_v28, 1e-24 }
  0xb9   : > { %3324 = vrsqrt.f32 %v368_v36 }
  0xba   : > { %v3313_v24 = vpop.eup %3312  ;;  %737 = vperm.xlu1 %3179, %v519_v18   ;;  %3326 = vrsqrt.f32 %v367_v38  ;;  %v330_v46 = vpop.xlane.xlu1 %329  ;;  %v1605_v18 = vld [vmem:[%s5016_s4 + $0x58] sm:$0xff] }
  0xbb   : > { %v3315_v29 = vpop.eup %3314  ;;  %v408_v33 = vmul.f32 %v3313_v24, %v3694_v2  ;;  %792 = vperm.xlu0 %3178, %v530_v20   ;;  %v327_v47 = vpop.xlane.xlu0 %326  ;;  %v366_v49 = vmax.f32 %v330_v46, 1e-24  ;;  %v1618_v46 = vld [vmem:[%s5016_s4 + $0xc0] sm:$0xff] }
  0xbc   : > { %v406_v35 = vmul.f32 %v3315_v29, %v3706_v7  ;;  %v1625_v7 = vld [vmem:[%s5016_s4 + $0xf8] sm:$0xff]  ;;  %v365_v53 = vmax.f32 %v327_v47, 1e-24  ;;  %v1599_v47 = vld [vmem:[%s5016_s4 + $0x28] sm:$0xff] }
  0xbd   : > { %v416_v3 = vpack.c.bf16 %v408_v33, %v407_v30  ;;  %3328 = vrsqrt.f32 %v366_v49  ;;  %v1622_v30 = vld [vmem:[%s5016_s4 + $0xe0] sm:$0xff]  ;;  %v1603_v33 = vld [vmem:[%s5016_s4 + $0x48] sm:$0xff] }
  0xbe   : > { %v3317_v39 = vpop.eup %3316  ;;  %v415_v40 = vpack.c.bf16 %v406_v35, %v405_v27  ;;  %807 = vperm.xlu1 %3179, %v533_v34   ;;  %3330 = vrsqrt.f32 %v365_v53  ;;  %v324_v58 = vpop.xlane.xlu1 %323  ;;  %v1619_v27 = vld [vmem:[%s5016_s4 + $0xc8] sm:$0xff]  ;;  %v1600_v53 = vld [vmem:[%s5016_s4 + $0x30] sm:$0xff] }
  0xbf   : > { %v3319_v1 = vpop.eup %3318  ;;  %3130 = vmatprep.subr.msk.bf16.mxu0 %vm312_vm0, %v416_v3  ;;  %v1143_v2 = vsel %vm312_vm0, %v416_v3, 0  ;;  %712 = vperm.xlu0 %3178, %v514_v37   ;;  %v404_v45 = vmul.f32 %v3317_v39, %v3709_v8  ;;  %v321_v59 = vpop.xlane.xlu0 %320  ;;  %v364_v61 = vmax.f32 %v324_v58, 1e-24  ;;  %v1620_v39 = vld [vmem:[%s5016_s4 + $0xd0] sm:$0xff]  ;;  %v3183_v58 = vld [vmem:[%s5013_s1 + $0x18] sm:$0xff]  }
  0xc0   : > { %3035 = vmatpush3.bf16.xpose.msra.mxu0 %v1143_v2  ;;  %v403_v44 = vmul.f32 %v3319_v1, %v3714_v10  ;;  %v1140_v8 = vsel %vm312_vm0, %v415_v40, 0  ;;  %v515_v10 = vld [vmem:[%s5014_s2 + $0x110] sm:$0xff] }
  0xc1   : > { %3131 = vmatprep.subr.msk.bf16.mxu0 %vm312_vm0, %v415_v40  ;;  %3332 = vrsqrt.f32 %v364_v61  ;;  %v1601_v40 = vld [vmem:[%s5016_s4 + $0x38] sm:$0xff]  ;;  %v1596_v61 = vld [vmem:[%s5016_s4 + $0x10] sm:$0xff] }
  0xc2   : > { %727 = vperm.xlu1 %3179, %v517_v43   ;;  %v3321_v51 = vpop.eup %3320  ;;  %v414_v52 = vpack.c.bf16 %v404_v45, %v403_v44  ;;  %v318_v12 = vpop.xlane.xlu1 %317 }
  0xc3   : > { %1783 = vperm.xlu0 %3178, %v1625_v7   ;;  %v3323_v54 = vpop.eup %3322  ;;  %v402_v57 = vmul.f32 %v3321_v51, %v3721_v14  ;;  %v513_v14 = vld [vmem:[%s5014_s2 + $0x100] sm:$0xff]  ;;  %v315_v13 = vpop.xlane.xlu0 %314  ;;  %v362_v17 = vmax.f32 %v318_v12, 1e-24  ;;  %v1597_v51 = vld [vmem:[%s5016_s4 + $0x18] sm:$0xff]  ;;  %v3189_v12 = vld [vmem:[%s5013_s1 + $0x48] sm:$0xff]  }
  0xc4   : > { %v401_v56 = vmul.f32 %v3323_v54, %v3724_v15  ;;  %v1137_v0 = vsel %vm312_vm0, %v414_v52, 0  ;;  %v363_v15 = vmax.f32 %v321_v59, 1e-24  ;;  %v1611_v54 = vld [vmem:[%s5016_s4 + $0x88] sm:$0xff]  ;;  %v1612_v59 = vld [vmem:[%s5016_s4 + $0x90] sm:$0xff] }
  0xc6   : > { %797 = vperm.xlu1 %3179, %v531_v48   ;;  %v3325_v63 = vpop.eup %3324  ;;  %v413_v4 = vpack.c.bf16 %v402_v57, %v401_v56  ;;  %3334 = vrsqrt.f32 %v363_v15  ;;  %v1595_v56 = vld [vmem:[%s5016_s4 + $0x8] sm:$0xff]  ;;  %v1598_v57 = vld [vmem:[%s5016_s4 + $0x20] sm:$0xff] }
  0xc7   : > { %1703 = vperm.xlu0 %3178, %v1609_v50   ;;  %v3327_v5 = vpop.eup %3326  ;;  %v400_v11 = vmul.f32 %v3325_v63, %v3735_v21  ;;  %v1608_v21 = vld [vmem:[%s5016_s4 + $0x70] sm:$0xff]  ;;  %3336 = vrsqrt.f32 %v362_v17  ;;  %v3185_v63 = vld [vmem:[%s5013_s1 + $0x28] sm:$0xff]   ;;  %v1594_v15 = vld [vmem:[%s5016_s4] sm:$0xff] }
  0xc8   : > { %3037 = vmatpush3.bf16.xpose.msra.mxu0 %v1140_v8  ;;  %v399_v9 = vmul.f32 %v3327_v5, %v3739_v23  ;;  %v1134_v20 = vsel %vm312_vm0, %v413_v4, 0  ;;  %v361_v23 = vmax.f32 %v315_v13, 1e-24  ;;  %v1616_v50 = vld [vmem:[%s5016_s4 + $0xb0] sm:$0xff]  ;;  %v3181_v8 = vld [vmem:[%s5013_s1 + $0x8] sm:$0xff]   ;;  %v3192_v17 = vld [vmem:[%s5013_s1 + $0x60] sm:$0xff]  }
  0xc9   : > { %3132 = vmatprep.subr.msk.bf16.mxu0 %vm312_vm0, %v414_v52  ;;  %v3190_v13 = vld [vmem:[%s5013_s1 + $0x50] sm:$0xff]  }
  0xca   : > { %717 = vperm.xlu1 %3179, %v515_v10   ;;  %v3329_v19 = vpop.eup %3328  ;;  %v412_v22 = vpack.c.bf16 %v400_v11, %v399_v9  ;;  %3338 = vrsqrt.f32 %v361_v23  ;;  %v1614_v10 = vld [vmem:[%s5016_s4 + $0xa0] sm:$0xff]  ;;  %v3197_v23 = vld [vmem:[%s5013_s1 + $0x88] sm:$0xff]  }
  0xcb   : > { %1773 = vperm.xlu0 %3178, %v1623_v55   ;;  %v3331_v24 = vpop.eup %3330  ;;  %v398_v29 = vmul.f32 %v3329_v19, %v3743_v25  ;;  %v1606_v25 = vld [vmem:[%s5016_s4 + $0x60] sm:$0xff]  ;;  %v3182_v55 = vld [vmem:[%s5013_s1 + $0x10] sm:$0xff]  }
  0xcc   : > { %v397_v28 = vmul.f32 %v3331_v24, %v3746_v26  ;;  %v1131_v35 = vsel %vm312_vm0, %v412_v22, 0  ;;  %v1617_v26 = vld [vmem:[%s5016_s4 + $0xb8] sm:$0xff]  ;;  %v3188_v9 = vld [vmem:[%s5013_s1 + $0x40] sm:$0xff]   ;;  %v3194_v19 = vld [vmem:[%s5013_s1 + $0x70] sm:$0xff]  }
  0xcd   : > { %v3198_v24 = vld [vmem:[%s5013_s1 + $0x90] sm:$0xff]  }
  0xce   : > { %787 = vperm.xlu1 %3179, %v529_v60   ;;  %v3333_v34 = vpop.eup %3332  ;;  %v411_v36 = vpack.c.bf16 %v398_v29, %v397_v28  ;;  %v3184_v60 = vld [vmem:[%s5013_s1 + $0x20] sm:$0xff]   ;;  %v3201_v29 = vld [vmem:[%s5013_s1 + $0xa8] sm:$0xff]  }
  0xcf   : > { %1693 = vperm.xlu0 %3178, %v1607_v62   ;;  %v396_v38 = vmul.f32 %v3333_v34, %v3755_v31  ;;  %v1604_v31 = vld [vmem:[%s5016_s4 + $0x50] sm:$0xff]  ;;  %v4120_v62 = vpop.permute.xlu1 %702  ;;  %v3203_v34 = vld [vmem:[%s5013_s1 + $0xb8] sm:$0xff]  }
  0xd0   : > { %3039 = vmatpush3.bf16.xpose.msra.mxu0 %v1137_v0  ;;  %v1128_v2 = vsel %vm312_vm0, %v411_v36, 0  ;;  %v1610_v0 = vld [vmem:[%s5016_s4 + $0x80] sm:$0xff] }
  0xd1   : > { %3133 = vmatprep.subr.msk.bf16.mxu0 %vm312_vm0, %v413_v4  ;;  %v3186_v4 = vld [vmem:[%s5013_s1 + $0x30] sm:$0xff]  }
  0xd2   : > { %707 = vperm.xlu1 %3179, %v513_v14   ;;  %v3187_v14 = vld [vmem:[%s5013_s1 + $0x38] sm:$0xff]  }
  0xd3   : > { %1763 = vperm.xlu0 %3178, %v1621_v6   ;;  %v3335_v37 = vpop.eup %3334  ;;  %v4136_v5 = vpop.permute.xlu1 %617  ;;  %v2477_v6 = vld [vmem:[%s5018_s6] sm:$0xf] }
  0xd4   : > { %v395_v3 = vmul.f32 %v3335_v37, %v3758_v32  ;;  %v3337_v1 = vpop.eup %3336  ;;  %v1615_v32 = vld [vmem:[%s5016_s4 + $0xa8] sm:$0xff] }
  0xd5   : > { %v394_v45 = vmul.f32 %v3337_v1, %v3773_v41  ;;  %v1613_v41 = vld [vmem:[%s5016_s4 + $0x98] sm:$0xff]  ;;  %v3208_v1 = vld [vmem:[%s5013_s1 + $0xe0] sm:$0xff]  }
  0xd6   : > { %1778 = vperm.xlu1 %3179, %v1624_v16   ;;  %v410_v43 = vpack.c.bf16 %v396_v38, %v395_v3  ;;  %v3191_v16 = vld [vmem:[%s5013_s1 + $0x58] sm:$0xff]   ;;  %v4229_v3 = vpop.permute.xlu0 %697 }
  0xd7   : > { %1683 = vperm.xlu0 %3178, %v1605_v18   ;;  %v3339_v7 = vpop.eup %3338  ;;  %v4147_v11 = vpop.permute.xlu1 %622  ;;  %v3193_v18 = vld [vmem:[%s5013_s1 + $0x68] sm:$0xff]  }
  0xd8   : > { %3041 = vmatpush3.bf16.xpose.msra.mxu0 %v1134_v20  ;;  %v393_v44 = vmul.f32 %v3339_v7, %v3776_v42  ;;  %v1125_v48 = vsel %vm312_vm0, %v410_v43, 0  ;;  %v1602_v42 = vld [vmem:[%s5016_s4 + $0x40] sm:$0xff]  ;;  %v3195_v20 = vld [vmem:[%s5013_s1 + $0x78] sm:$0xff]   ;;  %v3209_v7 = vld [vmem:[%s5013_s1 + $0xe8] sm:$0xff]  }
  0xd9   : > { %3134 = vmatprep.subr.msk.bf16.mxu0 %vm312_vm0, %v412_v22  ;;  %v3196_v22 = vld [vmem:[%s5013_s1 + $0x80] sm:$0xff]  }
  0xda   : > { %1698 = vperm.xlu1 %3179, %v1608_v21   ;;  %v409_v49 = vpack.c.bf16 %v394_v45, %v393_v44  ;;  %v3199_v21 = vld [vmem:[%s5013_s1 + $0x98] sm:$0xff]  }
  0xdb   : > { %1753 = vperm.xlu0 %3178, %v1619_v27   ;;  %v3200_v27 = vld [vmem:[%s5013_s1 + $0xa0] sm:$0xff]   ;;  %v4198_v28 = vpop.permute.xlu1 %687 }
  0xdc   : > { %v1122_v52 = vsel %vm312_vm0, %v409_v49, 0 }
  0xde   : > { %1768 = vperm.xlu1 %3179, %v1622_v30   ;;  %v3202_v30 = vld [vmem:[%s5013_s1 + $0xb0] sm:$0xff]  }
  0xdf   : > { %1673 = vperm.xlu0 %3178, %v1603_v33   ;;  %v4207_v33 = vpop.permute.xlu1 %692 }
  0xe0   : > { %3043 = vmatpush3.bf16.xpose.msra.mxu0 %v1131_v35 }
  0xe1   : > { %3135 = vmatprep.subr.msk.bf16.mxu0 %vm312_vm0, %v411_v36  ;;  %v3204_v36 = vld [vmem:[%s5013_s1 + $0xc0] sm:$0xff]  }
  0xe2   : > { %1688 = vperm.xlu1 %3179, %v1606_v25   ;;  %v3205_v25 = vld [vmem:[%s5013_s1 + $0xc8] sm:$0xff]  }
  0xe3   : > { %1743 = vperm.xlu0 %3178, %v1617_v26   ;;  %v4214_v35 = vpop.permute.xlu1 %607  ;;  %v3206_v26 = vld [vmem:[%s5013_s1 + $0xd0] sm:$0xff]  }
  0xe6   : > { %1758 = vperm.xlu1 %3179, %v1620_v39   ;;  %v4235_v39 = vpop.permute.xlu0 %682 }
  0xe7   : > { %1663 = vperm.xlu0 %3178, %v1601_v40   ;;  %v4221_v37 = vpop.permute.xlu1 %612  ;;  %v3207_v40 = vld [vmem:[%s5013_s1 + $0xd8] sm:$0xff]  }
  0xe8   : > { %3045 = vmatpush3.bf16.xpose.msra.mxu0 %v1128_v2 }
  0xe9   : > { %3136 = vmatprep.subr.msk.bf16.mxu0 %vm312_vm0, %v410_v43 }
  0xea   : > { %1678 = vperm.xlu1 %3179, %v1604_v31   ;;  %v4247_v43 = vpop.permute.xlu0 %602 }
  0xeb   : > { %1733 = vperm.xlu0 %3178, %v1615_v32   ;;  %v4232_v38 = vpop.permute.xlu1 %677  ;;  %v3210_v32 = vld [vmem:[%s5013_s1 + $0xf0] sm:$0xff]  }
  0xee   : > { %1748 = vperm.xlu1 %3179, %v1618_v46   ;;  %v4257_v44 = vpop.permute.xlu0 %672  ;;  %v3211_v46 = vld [vmem:[%s5013_s1 + $0xf8] sm:$0xff]  }
  0xef   : > { %1653 = vperm.xlu0 %3178, %v1599_v47   ;;  %v4243_v2 = vpop.permute.xlu1 %597 }
  0xf0   : > { %3047 = vmatpush3.bf16.xpose.msra.mxu0 %v1125_v48 }
  0xf1   : > { %3137 = vmatprep.subr.msk.bf16.mxu0 %vm312_vm0, %v409_v49 }
  0xf2   : > { %1668 = vperm.xlu1 %3179, %v1602_v42   ;;  %v4266_v47 = vpop.permute.xlu0 %592 }
  0xf3   : > { %1723 = vperm.xlu0 %3178, %v1613_v41   ;;  %v4252_v31 = vpop.permute.xlu1 %667 }
  0xf6   : > { %1738 = vperm.xlu1 %3179, %v1616_v50   ;;  %v4271_v49 = vpop.permute.xlu0 %662 }
  0xf7   : > { %1643 = vperm.xlu0 %3178, %v1597_v51   ;;  %v4261_v45 = vpop.permute.xlu1 %587 }
  0xf8   : > { %3049 = vmatpush3.bf16.xpose.msra.mxu0 %v1122_v52 }
  0xfa   : > { %1658 = vperm.xlu1 %3179, %v1600_v53   ;;  %v583_v41 = vpop.permute.xlu0 %582 }
  0xfb   : > { %1713 = vperm.xlu0 %3178, %v1611_v54   ;;  %v4269_v48 = vpop.permute.xlu1 %657 }
  0xfe   : > { %1728 = vperm.xlu1 %3179, %v1614_v10   ;;  %v4275_v51 = vpop.permute.xlu0 %652 }
  0xff   : > { %3051 = vmatmul.mubr.msk.bf16.vlgmr.msra.gmra.mxu0 %vm312_vm0, %v3181_v8  ;;  %1633 = vperm.xlu0 %3178, %v1595_v56   ;;  %v578_v42 = vpop.permute.xlu1 %577 }
 0x100   : > { %3054 = vmatprep.mubr.msk.bf16.mxu0 %vm312_vm0, %v3182_v55 }
 0x102   : > { %1648 = vperm.xlu1 %3179, %v1598_v57   ;;  %v573_v53 = vpop.permute.xlu0 %572 }
 0x103   : > { %v4273_v50 = vpop.permute.xlu1 %647 }
 0x106   : > { %1718 = vperm.xlu1 %3179, %v1612_v59   ;;  %v4279_v8 = vpop.permute.xlu0 %642 }
 0x107   : > { %3055 = vmatmul.mubr.msk.bf16.gmra.mxu0 %vm312_vm0, %v3183_v58  ;;  %v568_v52 = vpop.permute.xlu1 %567 }
 0x108   : > { %3058 = vmatprep.mubr.msk.bf16.mxu0 %vm312_vm0, %v3184_v60 }
 0x10a   : > { %1638 = vperm.xlu1 %3179, %v1596_v61   ;;  %v563_v55 = vpop.permute.xlu0 %562 }
 0x10b   : > { %v4277_v54 = vpop.permute.xlu1 %637 }
 0x10e   : > { %1708 = vperm.xlu1 %3179, %v1610_v0   ;;  %v4283_v57 = vpop.permute.xlu0 %632  ;;  %v3217_v0 = vld [vmem:[%s5015_s3 + $0xa4] ss:$16 sps:$4 sm:$0xff]  }
 0x10f   : > { %3059 = vmatmul.mubr.msk.bf16.gmra.mxu0 %vm312_vm0, %v3185_v63  ;;  %v558_v10 = vpop.permute.xlu1 %557  ;;  %v3214_v63 = vld [vmem:[%s5015_s3 + $0x4] ss:$16 sps:$4 sm:$0xff]   ;;  %2178 = vmatprep.mubr.bf16.mxu1 %v3217_v0 }
 0x110   : > { %3062 = vmatprep.mubr.msk.bf16.mxu0 %vm312_vm0, %v3186_v4 }
 0x112   : > { %1628 = vperm.xlu1 %3179, %v1594_v15   ;;  %v553_v59 = vpop.permute.xlu0 %552 }
 0x113   : > { %v4281_v56 = vpop.permute.xlu1 %627 }
 0x116   : > { %2480 = vperm.xlu1 %3179, %v2477_v6   ;;  %v4287_v61 = vpop.permute.xlu0 %862 }
 0x117   : > { %3063 = vmatmul.mubr.msk.bf16.gmra.mxu0 %vm312_vm0, %v3187_v14  ;;  %v548_v58 = vpop.permute.xlu1 %547  ;;  %5022 = vst [vmem:[#allocation5_spill] sm:$0xff] %v4287_v61 }
 0x118   : > { %3066 = vmatprep.mubr.msk.bf16.mxu0 %vm312_vm0, %v3188_v9 }
 0x11a   : > { %v4297_v15 = vpop.permute.xlu0 %782 }
 0x11b   : > { %v4285_v60 = vpop.permute.xlu1 %857 }
 0x11e   : > { %v4301_v6 = vpop.permute.xlu0 %852 }
 0x11f   : > { %3067 = vmatmul.mubr.msk.bf16.gmra.mxu0 %vm312_vm0, %v3189_v12  ;;  %v4295_v4 = vpop.permute.xlu1 %777  ;;  %5023 = vst [vmem:[#allocation6_spill] sm:$0xff] %v4301_v6 }
 0x120   : > { %3070 = vmatprep.mubr.msk.bf16.mxu0 %vm312_vm0, %v3190_v13 }
 0x122   : > { %v4305_v12 = vpop.permute.xlu0 %772 }
 0x123   : > { %v4299_v14 = vpop.permute.xlu1 %847  ;;  %5025 = vst [vmem:[#allocation8_spill] sm:$0xff] %v4305_v12 }
 0x127   : > { %3071 = vmatmul.mubr.msk.bf16.gmra.mxu0 %vm312_vm0, %v3191_v16  ;;  %v4303_v9 = vpop.permute.xlu1 %767 }
 0x128   : > { %3074 = vmatprep.mubr.msk.bf16.mxu0 %vm312_vm0, %v3192_v17  ;;  %5024 = vst [vmem:[#allocation7_spill] sm:$0xff] %v4303_v9 }
 0x12b   : > { %v4307_v16 = vpop.permute.xlu1 %837 }
 0x12c   : > { %5026 = vst [vmem:[#allocation9_spill] sm:$0xff] %v4307_v16 }
 0x12f   : > { %3075 = vmatmul.mubr.msk.bf16.gmra.mxu0 %vm312_vm0, %v3193_v18 }
 0x130   : > { %3078 = vmatprep.mubr.msk.bf16.mxu0 %vm312_vm0, %v3194_v19  ;;  %v4309_v19 = vpop.permute.xlu0 %842 }
 0x131   : > { %5027 = vst [vmem:[#allocation10_spill] sm:$0xff] %v4309_v19 }
 0x137   : > { %3079 = vmatmul.mubr.msk.bf16.gmra.mxu0 %vm312_vm0, %v3195_v20 }
 0x138   : > { %3082 = vmatprep.mubr.msk.bf16.mxu0 %vm312_vm0, %v3196_v22 }
 0x13f   : > { %3083 = vmatmul.mubr.msk.bf16.gmra.mxu0 %vm312_vm0, %v3197_v23 }
 0x140   : > { %3086 = vmatprep.mubr.msk.bf16.mxu0 %vm312_vm0, %v3198_v24 }
 0x147   : > { %3087 = vmatmul.mubr.msk.bf16.gmra.mxu0 %vm312_vm0, %v3199_v21  ;;  %v4311_v21 = vpop.permute.xlu1 %757 }
 0x148   : > { %3090 = vmatprep.mubr.msk.bf16.mxu0 %vm312_vm0, %v3200_v27  ;;  %5028 = vst [vmem:[#allocation11_spill] sm:$0xff] %v4311_v21 }
 0x14f   : > { %3091 = vmatmul.mubr.msk.bf16.gmra.mxu0 %vm312_vm0, %v3201_v29 }
 0x150   : > { %3094 = vmatprep.mubr.msk.bf16.mxu0 %vm312_vm0, %v3202_v30  ;;  %v4313_v30 = vpop.permute.xlu0 %762 }
 0x151   : > { %5029 = vst [vmem:[#allocation12_spill] sm:$0xff] %v4313_v30 }
 0x157   : > { %3095 = vmatmul.mubr.msk.bf16.gmra.mxu0 %vm312_vm0, %v3203_v34 }
 0x158   : > { %3098 = vmatprep.mubr.msk.bf16.mxu0 %vm312_vm0, %v3204_v36 }
 0x15f   : > { %3099 = vmatmul.mubr.msk.bf16.gmra.mxu0 %vm312_vm0, %v3205_v25 }
 0x160   : > { %3102 = vmatprep.mubr.msk.bf16.mxu0 %vm312_vm0, %v3206_v26 }
 0x167   : > { %3103 = vmatmul.mubr.msk.bf16.gmra.mxu0 %vm312_vm0, %v3207_v40  ;;  %v4315_v40 = vpop.permute.xlu1 %827 }
 0x168   : > { %3106 = vmatprep.mubr.msk.bf16.mxu0 %vm312_vm0, %v3208_v1  ;;  %5030 = vst [vmem:[#allocation13_spill] sm:$0xff] %v4315_v40 }
 0x16f   : > { %3107 = vmatmul.mubr.msk.bf16.gmra.mxu0 %vm312_vm0, %v3209_v7 }
 0x170   : > { %3110 = vmatprep.mubr.msk.bf16.mxu0 %vm312_vm0, %v3210_v32 }
 0x177   : > { %3111 = vmatmul.mubr.msk.bf16.gmra.mxu0 %vm312_vm0, %v3211_v46  ;;  %v4317_v46 = vpop.permute.xlu0 %832 }
 0x178   : > { %2138 = vmatprep.mubr.bf16.mxu0 %v3214_v63  ;;  %5031 = vst [vmem:[#allocation14_spill] sm:$0xff] %v4317_v46 }
 0x1bf   : > { %v3052_v13 = vpop.f32.mrf.mxu0 }
 0x1c0   : > { %v1188_v17 = vadd.f32 %v3052_v13, %v558_v10 }
 0x1c1   : > { %v1179_v18 = vpop.f32.mrf.mxu0 }
 0x1c2   : > { %v1180_v20 = vadd.f32 %v1179_v18, %v548_v58  ;;  %3340 = vtanh.f32 %v1188_v17 }
 0x1c3   : > { %v3053_v22 = vpop.f32.mrf.mxu0 }
 0x1c4   : > { %v1191_v23 = vadd.f32 %v3053_v22, %v563_v55 }
 0x1c5   : > { %v1182_v24 = vpop.f32.mrf.mxu0 }
 0x1c6   : > { %3342 = vtanh.f32 %v1191_v23  ;;  %v1183_v27 = vadd.f32 %v1182_v24, %v553_v59  ;;  %v4319_v59 = vpop.permute.xlu1 %747 }
 0x1c7   : > { %3344 = vtanh.f32 %v1180_v20  ;;  %v3056_v29 = vpop.f32.mrf.mxu0  ;;  %5032 = vst [vmem:[#allocation15_spill] sm:$0xff] %v4319_v59 }
 0x1c8   : > { %3346 = vtanh.f32 %v1183_v27  ;;  %v1204_v34 = vadd.f32 %v3056_v29, %v578_v42 }
 0x1c9   : > { %v1195_v36 = vpop.f32.mrf.mxu0 }
 0x1ca   : > { %v1196_v25 = vadd.f32 %v1195_v36, %v568_v52  ;;  %3348 = vtanh.f32 %v1204_v34  ;;  %v4327_v20 = vpop.permute.xlu1 %817 }
 0x1cb   : > { %v3057_v26 = vpop.f32.mrf.mxu0  ;;  %5034 = vst [vmem:[#allocation17_spill] sm:$0xff] %v4327_v20 }
 0x1cc   : > { %v1207_v1 = vadd.f32 %v3057_v26, %v583_v41  ;;  %v4323_v41 = vpop.permute.xlu0 %752 }
 0x1cd   : > { %v1198_v7 = vpop.f32.mrf.mxu0  ;;  %5033 = vst [vmem:[#allocation16_spill] sm:$0xff] %v4323_v41 }
 0x1ce   : > { %3350 = vtanh.f32 %v1207_v1  ;;  %v1199_v32 = vadd.f32 %v1198_v7, %v573_v53  ;;  %v4333_v1 = vpop.permute.xlu1 %737 }
 0x1cf   : > { %3352 = vtanh.f32 %v1196_v25  ;;  %v3060_v10 = vpop.f32.mrf.mxu0  ;;  %v3341_v58 = vpop.eup %3340 }
 0x1d0   : > { %3354 = vtanh.f32 %v1199_v32  ;;  %v4329_v27 = vpop.permute.xlu0 %822 }
 0x1d1   : > { %v1211_v55 = vpop.f32.mrf.mxu0  ;;  %5035 = vst [vmem:[#allocation18_spill] sm:$0xff] %v4329_v27 }
 0x1d3   : > { %v3343_v42 = vpop.eup %3342  ;;  %v3061_v63 = vpop.f32.mrf.mxu0 }
 0x1d4   : > { %v3345_v52 = vpop.eup %3344  ;;  %v4321_v0 = vpack.c.bf16 %v3343_v42, %v3341_v58  ;;  %v4339_v58 = vpop.permute.xlu0 %742  ;;  %v1223_v16 = vadd.f32 %v3061_v63, %v4247_v43 }
 0x1d5   : > { %v3347_v13 = vpop.eup %3346  ;;  %v1214_v17 = vpop.f32.mrf.mxu0 }
 0x1d6   : > { %v4325_v18 = vpack.c.bf16 %v3347_v13, %v3345_v52  ;;  %v4345_v13 = vpop.permute.xlu1 %807  ;;  %v1215_v19 = vadd.f32 %v1214_v17, %v4266_v47 }
 0x1d7   : > { %v3064_v53 = vpop.f32.mrf.mxu0  ;;  %v3349_v23 = vpop.eup %3348  ;;  %5036 = vst [vmem:[#allocation19_spill] sm:$0xff] %v4345_v13  ;;  %v1220_v13 = vadd.f32 %v3060_v10, %v4243_v2 }
 0x1d8   : > { %v1236_v6 = vadd.f32 %v3064_v53, %v4136_v5 }
 0x1d9   : > { %v1227_v22 = vpop.f32.mrf.mxu0  ;;  %3356 = vtanh.f32 %v1220_v13 }
 0x1db   : > { %v3351_v24 = vpop.eup %3350  ;;  %v3065_v29 = vpop.f32.mrf.mxu0 }
 0x1dc   : > { %v3353_v34 = vpop.eup %3352  ;;  %v4331_v36 = vpack.c.bf16 %v3351_v24, %v3349_v23  ;;  %v4349_v23 = vpop.permute.xlu0 %812  ;;  %v1239_v2 = vadd.f32 %v3065_v29, %v4147_v11 }
 0x1dd   : > { %v3355_v25 = vpop.eup %3354  ;;  %v1230_v26 = vpop.f32.mrf.mxu0  ;;  %5037 = vst [vmem:[#allocation20_spill] sm:$0xff] %v4349_v23  ;;  %v1212_v23 = vadd.f32 %v1211_v55, %v4261_v45 }
 0x1de   : > { %v4335_v7 = vpack.c.bf16 %v3355_v25, %v3353_v34  ;;  %v4355_v34 = vpop.permute.xlu1 %727  ;;  %v1231_v45 = vadd.f32 %v1230_v26, %v4221_v37 }
 0x1df   : > { %v4337_v32 = vpop.f32.mrf.mxu0  ;;  %3358 = vtanh.f32 %v1212_v23 }
 0x1e0   : > { %v4359_v27 = vpop.permute.xlu0 %732  ;;  %3360 = vtanh.f32 %v1223_v16 }
 0x1e1   : > { %v4341_v42 = vpop.f32.mrf.mxu0  ;;  %3362 = vtanh.f32 %v1215_v19 }
 0x1e2   : > { %v4363_v21 = vpop.permute.xlu1 %797  ;;  %3364 = vtanh.f32 %v1236_v6 }
 0x1e3   : > { %v4343_v52 = vpop.f32.mrf.mxu0  ;;  %5038 = vst [vmem:[#allocation21_spill] sm:$0xff] %v4363_v21  ;;  %v1228_v21 = vadd.f32 %v1227_v22, %v4214_v35 }
 0x1e4   : > { %v4367_v30 = vpop.permute.xlu0 %802 }
 0x1e5   : > { %v4347_v20 = vpop.f32.mrf.mxu0  ;;  %3366 = vtanh.f32 %v1228_v21 }
 0x1e6   : > { %v718_v61 = vpop.permute.xlu1 %717  ;;  %3368 = vtanh.f32 %v1239_v2 }
 0x1e7   : > { %v4351_v24 = vpop.f32.mrf.mxu0  ;;  %3370 = vtanh.f32 %v1231_v45 }
 0x1e8   : > { %v723_v55 = vpop.permute.xlu0 %722 }
 0x1e9   : > { %v4353_v59 = vpop.f32.mrf.mxu0 }
 0x1ea   : > { %v4377_v17 = vpop.permute.xlu1 %787  ;;  %v1260_v2 = vadd.f32 %v4353_v59, %v4273_v50 }
 0x1eb   : > { %v4357_v25 = vpop.f32.mrf.mxu0 }
 0x1ec   : > { %v4383_v6 = vpop.permute.xlu0 %792  ;;  %v1271_v26 = vadd.f32 %v4357_v25, %v4271_v49 }
 0x1ed   : > { %v4361_v41 = vpop.f32.mrf.mxu0 }
 0x1ef   : > { %v3076_v40 = vpop.f32.mrf.mxu0 }
 0x1f0   : > { %v1284_v11 = vadd.f32 %v3076_v40, %v4232_v38  ;;  %v4387_v38 = vpop.eup %3356  ;;  %v708_v40 = vpop.permute.xlu1 %707 }
 0x1f1   : > { %v1275_v46 = vpop.f32.mrf.mxu0 }
 0x1f2   : > { %v1276_v19 = vadd.f32 %v1275_v46, %v4252_v31 }
 0x1f3   : > { %v3077_v9 = vpop.f32.mrf.mxu0 }
 0x1f4   : > { %v1287_v37 = vadd.f32 %v3077_v9, %v4235_v39  ;;  %v4389_v39 = vpop.eup %3358 }
 0x1f5   : > { %v1278_v12 = vpop.f32.mrf.mxu0  ;;  %v4391_v22 = vpop.eup %3360 }
 0x1f6   : > { %v1279_v21 = vadd.f32 %v1278_v12, %v4257_v44  ;;  %v4393_v46 = vpop.eup %3362  ;;  %v713_v44 = vpop.permute.xlu0 %712 }
 0x1f7   : > { %v3080_v10 = vpop.f32.mrf.mxu0  ;;  %v3365_v29 = vpop.eup %3364 }
 0x1f8   : > { %v1300_v43 = vadd.f32 %v3080_v10, %v4229_v3  ;;  %v3367_v23 = vpop.eup %3366 }
 0x1f9   : > { %v1291_v47 = vpop.f32.mrf.mxu0  ;;  %v3369_v45 = vpop.eup %3368 }
 0x1fa   : > { %v1292_v5 = vadd.f32 %v1291_v47, %v4198_v28  ;;  %3372 = vtanh.f32 %v1300_v43 }
 0x1fb   : > { %v3081_v63 = vpop.f32.mrf.mxu0 }
 0x1fc   : > { %v1303_v35 = vadd.f32 %v3081_v63, %v4120_v62 }
 0x1fd   : > { %v1294_v16 = vpop.f32.mrf.mxu0 }
 0x1fe   : > { %3374 = vtanh.f32 %v1303_v35  ;;  %v1295_v3 = vadd.f32 %v1294_v16, %v4207_v33 }
 0x1ff   : > { %3376 = vtanh.f32 %v1292_v5  ;;  %v3084_v28 = vpop.f32.mrf.mxu0 }
 0x200   : > { %3378 = vtanh.f32 %v1295_v3  ;;  %v1316_v62 = vadd.f32 %v3084_v28, %v718_v61  ;;  %v1268_v61 = vadd.f32 %v4351_v24, %v4269_v48  ;;  %v3371_v48 = vpop.eup %3370 }
 0x201   : > { %3380 = vtanh.f32 %v1284_v11  ;;  %v1307_v53 = vpop.f32.mrf.mxu0 }
 0x202   : > { %3382 = vtanh.f32 %v1287_v37  ;;  %v1308_v33 = vadd.f32 %v1307_v53, %v708_v40 }
 0x203   : > { %3384 = vtanh.f32 %v1276_v19  ;;  %v3085_v9 = vpop.f32.mrf.mxu0  ;;  %v1252_v19 = vadd.f32 %v4337_v32, %v4277_v54  ;;  %v1244_v32 = vadd.f32 %v4341_v42, %v4281_v56 }
 0x204   : > { %3386 = vtanh.f32 %v1279_v21  ;;  %v1319_v31 = vadd.f32 %v3085_v9, %v723_v55  ;;  %v1263_v55 = vadd.f32 %v4361_v41, %v4275_v51  ;;  %v1505_v41 = vpack.c.bf16 %v3369_v45, %v3365_v29 }
 0x205   : > { %3388 = vtanh.f32 %v1316_v62  ;;  %v1310_v12 = vpop.f32.mrf.mxu0  ;;  %v1247_v21 = vadd.f32 %v4347_v20, %v4283_v57  ;;  %v1503_v20 = vpack.c.bf16 %v4391_v22, %v4387_v38  ;;  %v1502_v38 = vpack.c.bf16 %v4393_v46, %v4389_v39 }
 0x206   : > { %3390 = vtanh.f32 %v1319_v31  ;;  %v1311_v13 = vadd.f32 %v1310_v12, %v713_v44 }
 0x207   : > { %3392 = vtanh.f32 %v1308_v33  ;;  %v3088_v10 = vpop.f32.mrf.mxu0  ;;  %v3373_v47 = vpop.eup %3372 }
 0x208   : > { %3394 = vtanh.f32 %v1311_v13  ;;  %v1332_v24 = vadd.f32 %v3088_v10, %v4333_v1  ;;  %v1255_v1 = vadd.f32 %v4343_v52, %v4279_v8 }
 0x209   : > { %3396 = vtanh.f32 %v1268_v61  ;;  %v1323_v43 = vpop.f32.mrf.mxu0 }
 0x20a   : > { %3398 = vtanh.f32 %v1271_v26  ;;  %v1324_v25 = vadd.f32 %v1323_v43, %v4355_v34 }
 0x20b   : > { %v3375_v49 = vpop.eup %3374  ;;  %3400 = vtanh.f32 %v1260_v2  ;;  %v3089_v5 = vpop.f32.mrf.mxu0 }
 0x20c   : > { %v3377_v50 = vpop.eup %3376  ;;  %3402 = vtanh.f32 %v1263_v55  ;;  %v1335_v59 = vadd.f32 %v3089_v5, %v4339_v58  ;;  %v1513_v63 = vpack.c.bf16 %v3375_v49, %v3373_v47 }
 0x20d   : > { %v3379_v35 = vpop.eup %3378  ;;  %3404 = vtanh.f32 %v1332_v24  ;;  %v1326_v51 = vpop.f32.mrf.mxu0 }
 0x20e   : > { %v3381_v11 = vpop.eup %3380  ;;  %3406 = vtanh.f32 %v1335_v59  ;;  %v1327_v16 = vadd.f32 %v1326_v51, %v4359_v27  ;;  %2788 = vmatprep.subr.bf16.mxu0 %v1513_v63  ;;  %3114 = vmatprep.subr.bf16.mxu1 %v1513_v63  ;;  %v1512_v34 = vpack.c.bf16 %v3379_v35, %v3377_v50  ;;  %v1504_v27 = vpack.c.bf16 %v3371_v48, %v3367_v23 }
 0x20f   : > { %v3383_v37 = vpop.eup %3382  ;;  %3408 = vtanh.f32 %v1324_v25  ;;  %v4409_v3 = vpop.f32.mrf.mxu0  ;;  %2789 = vmatpush3.bf16.msra.mxu0 %v1505_v41  ;;  %3122 = vmatpush3.bf16.msra.mxu1 %v1505_v41  ;;  %v3215_v41 = vld [vmem:[%s5015_s3 + $0xa0] ss:$16 sps:$4 sm:$0xff]  }
 0x210   : > { %v3385_v58 = vpop.eup %3384  ;;  %3410 = vtanh.f32 %v1327_v16  ;;  %2790 = vmatprep.subr.bf16.mxu0 %v1512_v34  ;;  %3115 = vmatprep.subr.bf16.mxu1 %v1512_v34  ;;  %v1511_v62 = vpack.c.bf16 %v3383_v37, %v3381_v11 }
 0x211   : > { %v3387_v8 = vpop.eup %3386  ;;  %v4413_v52 = vpop.f32.mrf.mxu0  ;;  %3412 = vtanh.f32 %v1255_v1  ;;  %v3220_v1 = vld [vmem:[%s5015_s3 + $0xc4] ss:$16 sps:$4 sm:$0xff]  }
 0x212   : > { %v4415_v28 = vpop.eup %3388  ;;  %3414 = vtanh.f32 %v1252_v19  ;;  %v1510_v44 = vpack.c.bf16 %v3387_v8, %v3385_v58  ;;  %v3223_v58 = vld [vmem:[%s5015_s3 + $0xc0] ss:$16 sps:$4 sm:$0xff]   ;;  %v3224_v8 = vld [vmem:[%s5015_s3 + $0x44] ss:$16 sps:$4 sm:$0xff]  }
 0x213   : > { %v4419_v53 = vpop.eup %3390  ;;  %v4421_v40 = vpop.f32.mrf.mxu0  ;;  %2791 = vmatpush3.bf16.msra.mxu0 %v1504_v27  ;;  %3123 = vmatpush3.bf16.msra.mxu1 %v1504_v27  ;;  %3416 = vtanh.f32 %v1247_v21  ;;  %v3226_v27 = vld [vmem:[%s5015_s3 + $0xe4] ss:$16 sps:$4 sm:$0xff]  }
 0x214   : > { %v4423_v54 = vpop.eup %3392  ;;  %2792 = vmatprep.subr.bf16.mxu0 %v1511_v62  ;;  %3116 = vmatprep.subr.bf16.mxu1 %v1511_v62  ;;  %v1515_v33 = vpack.c.bf16 %v4419_v53, %v4415_v28  ;;  %3418 = vtanh.f32 %v1244_v32  ;;  %v3256_v28 = vld [vmem:[%s5015_s3 + $0x1c0] ss:$16 sps:$4 sm:$0xff]   ;;  %v3257_v53 = vld [vmem:[%s5015_s3 + $0x1e4] ss:$16 sps:$4 sm:$0xff]  }
 0x215   : > { %v4429_v9 = vpop.eup %3394  ;;  %v4431_v57 = vpop.f32.mrf.mxu0 }
 0x216   : > { %v3397_v31 = vpop.eup %3396  ;;  %v1514_v61 = vpack.c.bf16 %v4429_v9, %v4423_v54  ;;  %v3262_v54 = vld [vmem:[%s5015_s3 + $0xc] ss:$16 sps:$4 sm:$0xff]   ;;  %v3260_v9 = vld [vmem:[%s5015_s3 + $0x8] ss:$16 sps:$4 sm:$0xff]  }
 0x217   : > { %v3399_v12 = vpop.eup %3398  ;;  %v4437_v56 = vpop.f32.mrf.mxu0  ;;  %2793 = vmatpush3.bf16.msra.mxu0 %v1503_v20  ;;  %3124 = vmatpush3.bf16.msra.mxu1 %v1503_v20 }
 0x218   : > { %v3401_v42 = vpop.eup %3400  ;;  %2794 = vmatprep.subr.bf16.mxu0 %v1510_v44  ;;  %3117 = vmatprep.subr.bf16.mxu1 %v1510_v44  ;;  %v1509_v13 = vpack.c.bf16 %v3399_v12, %v3397_v31  ;;  %v1364_v62 = vadd.f32 %v4437_v56, %v4295_v4  ;;  %v3228_v12 = vld [vmem:[%s5015_s3 + $0x40] ss:$16 sps:$4 sm:$0xff]   ;;  %v3230_v56 = vld [vmem:[%s5015_s3 + $0x64] ss:$16 sps:$4 sm:$0xff]  }
 0x219   : > { %v3403_v29 = vpop.eup %3402  ;;  %v4439_v26 = vpop.f32.mrf.mxu0 }
 0x21a   : > { %v4443_v22 = vpop.eup %3404  ;;  %v1508_v39 = vpack.c.bf16 %v3403_v29, %v3401_v42  ;;  %v3229_v42 = vld [vmem:[%s5015_s3 + $0xe0] ss:$16 sps:$4 sm:$0xff]   ;;  %3420 = vtanh.f32 %v1364_v62 }
 0x21b   : > { %v4445_v23 = vpop.eup %3406  ;;  %v3097_v2 = vpop.f32.mrf.mxu0  ;;  %2795 = vmatpush3.bf16.msra.mxu0 %v1502_v38  ;;  %3125 = vmatpush3.bf16.msra.mxu1 %v1502_v38  ;;  %v5049_v62 = vld [vmem:[#allocation16_spill] sm:$0xff] }
 0x21c   : > { %v4447_v10 = vpop.eup %3408  ;;  %2796 = vmatprep.subr.bf16.mxu0 %v1509_v13  ;;  %3118 = vmatprep.subr.bf16.mxu1 %v1509_v13  ;;  %v1517_v45 = vpack.c.bf16 %v4445_v23, %v4443_v22  ;;  %v1367_v20 = vadd.f32 %v3097_v2, %v4297_v15  ;;  %v5039_v15 = vld [vmem:[#allocation5_spill] sm:$0xff]  ;;  %v5040_v2 = vld [vmem:[#allocation8_spill] sm:$0xff] }
 0x21d   : > { %v4451_v55 = vpop.eup %3410  ;;  %v4453_v48 = vpop.f32.mrf.mxu0  ;;  %v3253_v23 = vld [vmem:[%s5015_s3 + $0x1a0] ss:$16 sps:$4 sm:$0xff]  }
 0x21e   : > { %v1516_v46 = vpack.c.bf16 %v4451_v55, %v4447_v10  ;;  %v3413_v24 = vpop.eup %3412  ;;  %3422 = vtanh.f32 %v1367_v20  ;;  %v3265_v10 = vld [vmem:[%s5015_s3 + $0x28] ss:$16 sps:$4 sm:$0xff]   ;;  %v3266_v55 = vld [vmem:[%s5015_s3 + $0x4c] ss:$16 sps:$4 sm:$0xff]  }
 0x21f   : > { %v4457_v43 = vpop.f32.mrf.mxu0  ;;  %2797 = vmatpush3.bf16.msra.mxu0 %v4331_v36  ;;  %3126 = vmatpush3.bf16.msra.mxu1 %v4331_v36  ;;  %v3415_v47 = vpop.eup %3414 }
 0x220   : > { %2798 = vmatprep.subr.bf16.mxu0 %v1508_v39  ;;  %3119 = vmatprep.subr.bf16.mxu1 %v1508_v39  ;;  %v1507_v25 = vpack.c.bf16 %v3413_v24, %v3415_v47  ;;  %v3417_v5 = vpop.eup %3416  ;;  %v1359_v39 = vadd.f32 %v4453_v48, %v5040_v2  ;;  %v5041_v24 = vld [vmem:[#allocation6_spill] sm:$0xff] }
 0x221   : > { %v4461_v49 = vpop.f32.mrf.mxu0  ;;  %v3419_v59 = vpop.eup %3418  ;;  %v5042_v47 = vld [vmem:[#allocation10_spill] sm:$0xff] }
 0x222   : > { %v1506_v35 = vpack.c.bf16 %v3417_v5, %v3419_v59  ;;  %v5043_v5 = vld [vmem:[#allocation7_spill] sm:$0xff]  ;;  %v3234_v48 = vld [vmem:[%s5015_s3 + $0x60] ss:$16 sps:$4 sm:$0xff]  }
 0x223   : > { %v4463_v50 = vpop.f32.mrf.mxu0  ;;  %2799 = vmatpush3.bf16.msra.mxu0 %v4335_v7  ;;  %3127 = vmatpush3.bf16.msra.mxu1 %v4335_v7  ;;  %v3212_v7 = vld [vmem:[%s5015_s3] ss:$16 sps:$4 sm:$0xff]   ;;  %v1356_v59 = vadd.f32 %v4439_v26, %v5043_v5  ;;  %v3236_v26 = vld [vmem:[%s5015_s3 + $0x84] ss:$16 sps:$4 sm:$0xff]   ;;  %v5055_v5 = vld [vmem:[#allocation21_spill] sm:$0xff] }
 0x224   : > { %2800 = vmatprep.subr.bf16.mxu0 %v1507_v25  ;;  %3120 = vmatprep.subr.bf16.mxu1 %v1507_v25 }
 0x225   : > { %v4467_v63 = vpop.f32.mrf.mxu0 }
 0x227   : > { %v4469_v36 = vpop.f32.mrf.mxu0  ;;  %2801 = vmatpush3.bf16.msra.mxu0 %v4321_v0  ;;  %3128 = vmatpush3.bf16.msra.mxu1 %v4321_v0  ;;  %v3218_v0 = vld [vmem:[%s5015_s3 + $0x24] ss:$16 sps:$4 sm:$0xff]  }
 0x228   : > { %2802 = vmatprep.subr.bf16.mxu0 %v1506_v35  ;;  %3121 = vmatprep.subr.bf16.mxu1 %v1506_v35  ;;  %v5044_v35 = vld [vmem:[#allocation9_spill] sm:$0xff] }
 0x229   : > { %v4473_v51 = vpop.f32.mrf.mxu0 }
 0x22b   : > { %v4481_v11 = vpop.f32.mrf.mxu0  ;;  %2803 = vmatpush3.bf16.msra.mxu0 %v4325_v18  ;;  %3129 = vmatpush3.bf16.msra.mxu1 %v4325_v18  ;;  %v3222_v18 = vld [vmem:[%s5015_s3 + $0x20] ss:$16 sps:$4 sm:$0xff]  }
 0x22d   : > { %v4491_v16 = vpop.f32.mrf.mxu0 }
 0x22e   : > { %2139 = vmatmul.mubr.bf16.vlgmr.msra.gmra.mxu0 %v3212_v7  ;;  %2179 = vmatmul.mubr.bf16.vlgmr.msra.gmra.mxu1 %v3215_v41  ;;  %v5045_v41 = vld [vmem:[#allocation12_spill] sm:$0xff] }
 0x22f   : > { %v3108_v34 = vpop.f32.mrf.mxu0  ;;  %2146 = vmatprep.mubr.bf16.mxu0 %v3218_v0  ;;  %2186 = vmatprep.mubr.bf16.mxu1 %v3220_v1  ;;  %v1351_v0 = vadd.f32 %v4421_v40, %v5045_v41  ;;  %v3235_v1 = vld [vmem:[%s5015_s3 + $0x100] ss:$16 sps:$4 sm:$0xff]   ;;  %v3238_v40 = vld [vmem:[%s5015_s3 + $0x124] ss:$16 sps:$4 sm:$0xff]  }
 0x230   : > { %v1412_v7 = vadd.f32 %v3108_v34, %v5044_v35  ;;  %v5047_v34 = vld [vmem:[#allocation11_spill] sm:$0xff] }
 0x231   : > { %v1403_v37 = vpop.f32.mrf.mxu0 }
 0x233   : > { %v3109_v19 = vpop.f32.mrf.mxu0 }
 0x234   : > { %v1415_v25 = vadd.f32 %v3109_v19, %v5042_v47  ;;  %v1348_v19 = vadd.f32 %v4409_v3, %v5047_v34 }
 0x235   : > { %v1406_v21 = vpop.f32.mrf.mxu0 }
 0x236   : > { %2147 = vmatmul.mubr.bf16.gmra.mxu0 %v3222_v18  ;;  %2187 = vmatmul.mubr.bf16.gmra.mxu1 %v3223_v58  ;;  %v5046_v18 = vld [vmem:[#allocation14_spill] sm:$0xff] }
 0x237   : > { %v3112_v32 = vpop.f32.mrf.mxu0  ;;  %2154 = vmatprep.mubr.bf16.mxu0 %v3224_v8  ;;  %2194 = vmatprep.mubr.bf16.mxu1 %v3226_v27  ;;  %v1407_v58 = vadd.f32 %v1406_v21, %v5046_v18  ;;  %v5048_v8 = vld [vmem:[#allocation13_spill] sm:$0xff]  ;;  %v5050_v21 = vld [vmem:[#allocation18_spill] sm:$0xff] }
 0x238   : > { %v1428_v31 = vadd.f32 %v3112_v32, %v4285_v60  ;;  %v3232_v60 = vld [vmem:[%s5015_s3 + $0x104] ss:$16 sps:$4 sm:$0xff]   ;;  %v1404_v27 = vadd.f32 %v1403_v37, %v5048_v8  ;;  %v1343_v32 = vadd.f32 %v4431_v57, %v5049_v62  ;;  %v1399_v20 = vadd.f32 %v4481_v11, %v5050_v21  ;;  %v3240_v57 = vld [vmem:[%s5015_s3 + $0x80] ss:$16 sps:$4 sm:$0xff]  }
 0x239   : > { %v1419_v44 = vpop.f32.mrf.mxu0  ;;  %v3241_v11 = vld [vmem:[%s5015_s3 + $0x120] ss:$16 sps:$4 sm:$0xff]  }
 0x23a   : > { %v1420_v29 = vadd.f32 %v1419_v44, %v4299_v14  ;;  %3424 = vtanh.f32 %v1428_v31  ;;  %v3421_v31 = vpop.eup %3420  ;;  %v5051_v44 = vld [vmem:[#allocation15_spill] sm:$0xff]  ;;  %v3247_v8 = vld [vmem:[%s5015_s3 + $0x160] ss:$16 sps:$4 sm:$0xff]  }
 0x23b   : > { %v3113_v4 = vpop.f32.mrf.mxu0  ;;  %v1340_v3 = vadd.f32 %v4413_v52, %v5051_v44 }
 0x23c   : > { %v1431_v38 = vadd.f32 %v3113_v4, %v5039_v15 }
 0x23d   : > { %v1422_v13 = vpop.f32.mrf.mxu0 }
 0x23e   : > { %3426 = vtanh.f32 %v1431_v38  ;;  %v1423_v14 = vadd.f32 %v1422_v13, %v5041_v24  ;;  %2155 = vmatmul.mubr.bf16.gmra.mxu0 %v3228_v12  ;;  %2195 = vmatmul.mubr.bf16.gmra.mxu1 %v3229_v42  ;;  %v3423_v12 = vpop.eup %3422  ;;  %v5052_v42 = vld [vmem:[#allocation17_spill] sm:$0xff]  ;;  %v5054_v13 = vld [vmem:[#allocation19_spill] sm:$0xff] }
 0x23f   : > { %3428 = vtanh.f32 %v1420_v29  ;;  %2162 = vmatprep.mubr.bf16.mxu0 %v3230_v56  ;;  %2202 = vmatprep.mubr.bf16.mxu1 %v3232_v60  ;;  %v1396_v37 = vadd.f32 %v4469_v36, %v5052_v42  ;;  %v5053_v56 = vld [vmem:[#allocation20_spill] sm:$0xff]  ;;  %v1388_v2 = vadd.f32 %v4473_v51, %v5054_v13  ;;  %v3286_v13 = vld [vmem:[%s5015_s3 + $0x108] ss:$16 sps:$4 sm:$0xff]  }
 0x240   : > { %3430 = vtanh.f32 %v1423_v14  ;;  %v1391_v52 = vadd.f32 %v4491_v16, %v5053_v56  ;;  %v3242_v36 = vld [vmem:[%s5015_s3 + $0x144] ss:$16 sps:$4 sm:$0xff]   ;;  %v1383_v16 = vadd.f32 %v4463_v50, %v4367_v30  ;;  %v1375_v30 = vadd.f32 %v4467_v63, %v4383_v6  ;;  %v3277_v56 = vld [vmem:[%s5015_s3 + $0xa8] ss:$16 sps:$4 sm:$0xff]  }
 0x241   : > { %3432 = vtanh.f32 %v1359_v39  ;;  %v1521_v39 = vpack.c.bf16 %v3423_v12, %v3421_v31  ;;  %v3250_v31 = vld [vmem:[%s5015_s3 + $0x180] ss:$16 sps:$4 sm:$0xff]  }
 0x242   : > { %3434 = vtanh.f32 %v1415_v25 }
 0x243   : > { %3436 = vtanh.f32 %v1356_v59  ;;  %v1380_v59 = vadd.f32 %v4457_v43, %v5055_v5  ;;  %v3298_v5 = vld [vmem:[%s5015_s3 + $0x188] ss:$16 sps:$4 sm:$0xff]  }
 0x244   : > { %3438 = vtanh.f32 %v1412_v7  ;;  %v3244_v7 = vld [vmem:[%s5015_s3 + $0x140] ss:$16 sps:$4 sm:$0xff]  }
 0x245   : > { %3440 = vtanh.f32 %v1351_v0  ;;  %v3245_v0 = vld [vmem:[%s5015_s3 + $0x164] ss:$16 sps:$4 sm:$0xff]  }
 0x246   : > { %2163 = vmatmul.mubr.bf16.gmra.mxu0 %v3234_v48  ;;  %2203 = vmatmul.mubr.bf16.gmra.mxu1 %v3235_v1  ;;  %3442 = vtanh.f32 %v1407_v58  ;;  %v1372_v1 = vadd.f32 %v4461_v49, %v4377_v17  ;;  %v3248_v49 = vld [vmem:[%s5015_s3 + $0x184] ss:$16 sps:$4 sm:$0xff]  }
 0x247   : > { %2170 = vmatprep.mubr.bf16.mxu0 %v3236_v26  ;;  %2210 = vmatprep.mubr.bf16.mxu1 %v3238_v40  ;;  %3444 = vtanh.f32 %v1348_v19  ;;  %v3425_v29 = vpop.eup %3424 }
 0x248   : > { %3446 = vtanh.f32 %v1404_v27 }
 0x249   : > { %3448 = vtanh.f32 %v1343_v32 }
 0x24a   : > { %3450 = vtanh.f32 %v1399_v20 }
 0x24b   : > { %v3427_v4 = vpop.eup %3426  ;;  %3452 = vtanh.f32 %v1340_v3  ;;  %v3251_v3 = vld [vmem:[%s5015_s3 + $0x1a4] ss:$16 sps:$4 sm:$0xff]  }
 0x24c   : > { %v3429_v60 = vpop.eup %3428  ;;  %v1529_v15 = vpack.c.bf16 %v3427_v4, %v3425_v29  ;;  %3454 = vtanh.f32 %v1396_v37  ;;  %v3269_v37 = vld [vmem:[%s5015_s3 + $0x6c] ss:$16 sps:$4 sm:$0xff]   ;;  %v3271_v29 = vld [vmem:[%s5015_s3 + $0x68] ss:$16 sps:$4 sm:$0xff]  }
 0x24d   : > { %v3431_v38 = vpop.eup %3430  ;;  %3456 = vtanh.f32 %v1391_v52  ;;  %v3275_v4 = vld [vmem:[%s5015_s3 + $0xac] ss:$16 sps:$4 sm:$0xff]  }
 0x24e   : > { %2171 = vmatmul.mubr.bf16.gmra.mxu0 %v3240_v57  ;;  %2211 = vmatmul.mubr.bf16.gmra.mxu1 %v3241_v11  ;;  %v1528_v24 = vpack.c.bf16 %v3431_v38, %v3429_v60  ;;  %v3433_v14 = vpop.eup %3432  ;;  %3458 = vtanh.f32 %v1388_v2  ;;  %v3272_v57 = vld [vmem:[%s5015_s3 + $0x8c] ss:$16 sps:$4 sm:$0xff]   ;;  %v3274_v11 = vld [vmem:[%s5015_s3 + $0x88] ss:$16 sps:$4 sm:$0xff]  }
 0x24f   : > { %2900 = vmatprep.subr.bf16.mxu1 %v1529_v15  ;;  %2218 = vmatprep.mubr.bf16.mxu1 %v3242_v36  ;;  %v3435_v47 = vpop.eup %3434  ;;  %3460 = vtanh.f32 %v1383_v16  ;;  %v3278_v52 = vld [vmem:[%s5015_s3 + $0xcc] ss:$16 sps:$4 sm:$0xff]   ;;  %v3280_v36 = vld [vmem:[%s5015_s3 + $0xc8] ss:$16 sps:$4 sm:$0xff]  }
 0x250   : > { %2901 = vmatpush3.bf16.msra.mxu1 %v1521_v39  ;;  %v3437_v25 = vpop.eup %3436  ;;  %3462 = vtanh.f32 %v1380_v59  ;;  %v3281_v60 = vld [vmem:[%s5015_s3 + $0xec] ss:$16 sps:$4 sm:$0xff]   ;;  %v3283_v15 = vld [vmem:[%s5015_s3 + $0xe8] ss:$16 sps:$4 sm:$0xff]  }
 0x251   : > { %2902 = vmatprep.subr.bf16.mxu1 %v1528_v24  ;;  %v3439_v51 = vpop.eup %3438  ;;  %v1520_v35 = vpack.c.bf16 %v3433_v14, %v3437_v25  ;;  %3464 = vtanh.f32 %v1375_v30  ;;  %v3284_v38 = vld [vmem:[%s5015_s3 + $0x10c] ss:$16 sps:$4 sm:$0xff]   ;;  %v3289_v39 = vld [vmem:[%s5015_s3 + $0x128] ss:$16 sps:$4 sm:$0xff]  }
 0x252   : > { %v3441_v41 = vpop.eup %3440  ;;  %v1527_v50 = vpack.c.bf16 %v3435_v47, %v3439_v51  ;;  %3466 = vtanh.f32 %v1372_v1  ;;  %v3287_v2 = vld [vmem:[%s5015_s3 + $0x12c] ss:$16 sps:$4 sm:$0xff]   ;;  %v3292_v14 = vld [vmem:[%s5015_s3 + $0x148] ss:$16 sps:$4 sm:$0xff]  }
 0x253   : > { %v3443_v48 = vpop.eup %3442  ;;  %v3290_v24 = vld [vmem:[%s5015_s3 + $0x14c] ss:$16 sps:$4 sm:$0xff]   ;;  %v3295_v47 = vld [vmem:[%s5015_s3 + $0x168] ss:$16 sps:$4 sm:$0xff]  }
 0x254   : > { %2903 = vmatpush3.bf16.msra.mxu1 %v1520_v35  ;;  %v3445_v43 = vpop.eup %3444  ;;  %v3293_v16 = vld [vmem:[%s5015_s3 + $0x16c] ss:$16 sps:$4 sm:$0xff]   ;;  %v3301_v51 = vld [vmem:[%s5015_s3 + $0x1a8] ss:$16 sps:$4 sm:$0xff]  }
 0x255   : > { %2904 = vmatprep.subr.bf16.mxu1 %v1527_v50  ;;  %v3447_v18 = vpop.eup %3446  ;;  %v1519_v58 = vpack.c.bf16 %v3441_v41, %v3445_v43  ;;  %v3296_v25 = vld [vmem:[%s5015_s3 + $0x18c] ss:$16 sps:$4 sm:$0xff]   ;;  %v4709_v41 = vpop.permute.xlu1 %1778  ;;  %v3304_v43 = vld [vmem:[%s5015_s3 + $0x1c8] ss:$16 sps:$4 sm:$0xff]  }
 0x256   : > { %2219 = vmatmul.mubr.bf16.gmra.mxu1 %v3244_v7  ;;  %v3449_v26 = vpop.eup %3448  ;;  %v1526_v40 = vpack.c.bf16 %v3443_v48, %v3447_v18  ;;  %v3299_v59 = vld [vmem:[%s5015_s3 + $0x1ac] ss:$16 sps:$4 sm:$0xff]   ;;  %5056 = vst [vmem:[#allocation5_spill] sm:$0xff] %v4709_v41  ;;  %v4711_v50 = vpop.permute.xlu0 %1783 }
 0x257   : > { %2226 = vmatprep.mubr.bf16.mxu1 %v3245_v0  ;;  %v3451_v6 = vpop.eup %3450  ;;  %v3302_v35 = vld [vmem:[%s5015_s3 + $0x1cc] ss:$16 sps:$4 sm:$0xff]   ;;  %5057 = vst [vmem:[#allocation8_spill] sm:$0xff] %v4711_v50 }
 0x258   : > { %2905 = vmatpush3.bf16.msra.mxu1 %v1519_v58  ;;  %v3453_v63 = vpop.eup %3452  ;;  %v3305_v1 = vld [vmem:[%s5015_s3 + $0x1ec] ss:$16 sps:$4 sm:$0xff]  }
 0x259   : > { %2906 = vmatprep.subr.bf16.mxu1 %v1526_v40  ;;  %v3455_v34 = vpop.eup %3454  ;;  %v1518_v19 = vpack.c.bf16 %v3449_v26, %v3453_v63  ;;  %v4721_v58 = vpop.permute.xlu1 %1698 }
 0x25a   : > { %v1525_v17 = vpack.c.bf16 %v3451_v6, %v3455_v34  ;;  %v3457_v27 = vpop.eup %3456  ;;  %v4725_v6 = vpop.permute.xlu0 %1703 }
 0x25b   : > { %v3459_v62 = vpop.eup %3458 }
 0x25c   : > { %2907 = vmatpush3.bf16.msra.mxu1 %v1518_v19  ;;  %v1524_v32 = vpack.c.bf16 %v3457_v27, %v3459_v62  ;;  %v3461_v21 = vpop.eup %3460 }
 0x25d   : > { %2908 = vmatprep.subr.bf16.mxu1 %v1525_v17  ;;  %v3463_v20 = vpop.eup %3462  ;;  %v4732_v17 = vpop.permute.xlu1 %1768 }
 0x25e   : > { %2227 = vmatmul.mubr.bf16.gmra.mxu1 %v3247_v8  ;;  %v1523_v44 = vpack.c.bf16 %v3461_v21, %v3463_v20  ;;  %v3465_v12 = vpop.eup %3464  ;;  %v3307_v8 = vld [vmem:[%s5015_s3 + $0x1e8] ss:$16 sps:$4 sm:$0xff]   ;;  %5058 = vst [vmem:[#allocation6_spill] sm:$0xff] %v4732_v17  ;;  %v4734_v27 = vpop.permute.xlu0 %1773 }
 0x25f   : > { %2234 = vmatprep.mubr.bf16.mxu1 %v3248_v49  ;;  %v3467_v42 = vpop.eup %3466  ;;  %5059 = vst [vmem:[#allocation10_spill] sm:$0xff] %v4734_v27 }
 0x260   : > { %2909 = vmatpush3.bf16.msra.mxu1 %v1517_v45  ;;  %v1522_v22 = vpack.c.bf16 %v3465_v12, %v3467_v42  ;;  %v3254_v45 = vld [vmem:[%s5015_s3 + $0x1c4] ss:$16 sps:$4 sm:$0xff]  }
 0x261   : > { %2910 = vmatprep.subr.bf16.mxu1 %v1524_v32  ;;  %v4738_v20 = vpop.permute.xlu1 %1688 }
 0x264   : > { %2911 = vmatpush3.bf16.msra.mxu1 %v1516_v46  ;;  %v3268_v46 = vld [vmem:[%s5015_s3 + $0x48] ss:$16 sps:$4 sm:$0xff]  }
 0x265   : > { %2912 = vmatprep.subr.bf16.mxu1 %v1523_v44 }
 0x266   : > { %2235 = vmatmul.mubr.bf16.gmra.mxu1 %v3250_v31 }
 0x267   : > { %2242 = vmatprep.mubr.bf16.mxu1 %v3251_v3  ;;  %v4742_v3 = vpop.permute.xlu0 %1693 }
 0x268   : > { %2913 = vmatpush3.bf16.msra.mxu1 %v1515_v33  ;;  %v3259_v33 = vld [vmem:[%s5015_s3 + $0x1e0] ss:$16 sps:$4 sm:$0xff]  }
 0x269   : > { %2914 = vmatprep.subr.bf16.mxu1 %v1522_v22 }
 0x26c   : > { %2915 = vmatpush3.bf16.msra.mxu1 %v1514_v61  ;;  %v3263_v61 = vld [vmem:[%s5015_s3 + $0x2c] ss:$16 sps:$4 sm:$0xff]  }
 0x26e   : > { %2243 = vmatmul.mubr.bf16.gmra.mxu1 %v3253_v23  ;;  %v4746_v23 = vpop.permute.xlu1 %1758 }
 0x26f   : > { %2250 = vmatprep.mubr.bf16.mxu1 %v3254_v45  ;;  %5060 = vst [vmem:[#allocation7_spill] sm:$0xff] %v4746_v23 }
 0x276   : > { %2251 = vmatmul.mubr.bf16.gmra.mxu1 %v3256_v28  ;;  %v4748_v28 = vpop.permute.xlu0 %1763 }
 0x277   : > { %2258 = vmatprep.mubr.bf16.mxu1 %v3257_v53  ;;  %5061 = vst [vmem:[#allocation9_spill] sm:$0xff] %v4748_v28 }
 0x27e   : > { %2259 = vmatmul.mubr.bf16.gmra.mxu1 %v3259_v33 }
 0x27f   : > { %2299 = vmatprep.mubr.bf16.mxu1 %v3262_v54 }
 0x286   : > { %2300 = vmatmul.mubr.bf16.vlgmr.msra.gmra.mxu1 %v3260_v9  ;;  %v4752_v9 = vpop.permute.xlu1 %1678 }
 0x287   : > { %2307 = vmatprep.mubr.bf16.mxu1 %v3263_v61 }
 0x28e   : > { %2308 = vmatmul.mubr.bf16.gmra.mxu1 %v3265_v10 }
 0x28f   : > { %2315 = vmatprep.mubr.bf16.mxu1 %v3266_v55  ;;  %v4756_v55 = vpop.permute.xlu0 %1683 }
 0x296   : > { %2316 = vmatmul.mubr.bf16.gmra.mxu1 %v3268_v46 }
 0x297   : > { %2323 = vmatprep.mubr.bf16.mxu1 %v3269_v37 }
 0x29e   : > { %2324 = vmatmul.mubr.bf16.gmra.mxu1 %v3271_v29 }
 0x29f   : > { %2331 = vmatprep.mubr.bf16.mxu1 %v3272_v57  ;;  %v4760_v57 = vpop.permute.xlu1 %1748 }
 0x2a0   : > { %5062 = vst [vmem:[#allocation12_spill] sm:$0xff] %v4760_v57 }
 0x2a6   : > { %2332 = vmatmul.mubr.bf16.gmra.mxu1 %v3274_v11 }
 0x2a7   : > { %2339 = vmatprep.mubr.bf16.mxu1 %v3275_v4  ;;  %v4762_v4 = vpop.permute.xlu0 %1753 }
 0x2a8   : > { %5063 = vst [vmem:[#allocation14_spill] sm:$0xff] %v4762_v4 }
 0x2ae   : > { %2340 = vmatmul.mubr.bf16.gmra.mxu1 %v3277_v56 }
 0x2af   : > { %2347 = vmatprep.mubr.bf16.mxu1 %v3278_v52 }
 0x2b6   : > { %2348 = vmatmul.mubr.bf16.gmra.mxu1 %v3280_v36 }
 0x2b7   : > { %2355 = vmatprep.mubr.bf16.mxu1 %v3281_v60  ;;  %v4766_v60 = vpop.permute.xlu1 %1668 }
 0x2be   : > { %2356 = vmatmul.mubr.bf16.gmra.mxu1 %v3283_v15 }
 0x2bf   : > { %2363 = vmatprep.mubr.bf16.mxu1 %v3284_v38 }
 0x2c6   : > { %2364 = vmatmul.mubr.bf16.gmra.mxu1 %v3286_v13 }
 0x2c7   : > { %2371 = vmatprep.mubr.bf16.mxu1 %v3287_v2  ;;  %v4770_v2 = vpop.permute.xlu0 %1673 }
 0x2ce   : > { %2372 = vmatmul.mubr.bf16.gmra.mxu1 %v3289_v39 }
 0x2cf   : > { %2379 = vmatprep.mubr.bf16.mxu1 %v3290_v24 }
 0x2d6   : > { %2380 = vmatmul.mubr.bf16.gmra.mxu1 %v3292_v14 }
 0x2d7   : > { %2387 = vmatprep.mubr.bf16.mxu1 %v3293_v16 }
 0x2de   : > { %2388 = vmatmul.mubr.bf16.gmra.mxu1 %v3295_v47  ;;  %v4774_v47 = vpop.permute.xlu1 %1738 }
 0x2df   : > { %2395 = vmatprep.mubr.bf16.mxu1 %v3296_v25  ;;  %5064 = vst [vmem:[#allocation11_spill] sm:$0xff] %v4774_v47 }
 0x2e6   : > { %2396 = vmatmul.mubr.bf16.gmra.mxu1 %v3298_v5  ;;  %v4776_v5 = vpop.permute.xlu0 %1743 }
 0x2e7   : > { %2403 = vmatprep.mubr.bf16.mxu1 %v3299_v59  ;;  %5065 = vst [vmem:[#allocation13_spill] sm:$0xff] %v4776_v5 }
 0x2ee   : > { %v2834_v7 = vpop.f32.mrf.mxu1  ;;  %2404 = vmatmul.mubr.bf16.gmra.mxu1 %v3301_v51  ;;  %v2804_v38 = vpop.f32.mrf.mxu0 }
 0x2ef   : > { %2411 = vmatprep.mubr.bf16.mxu1 %v3302_v35 }
 0x2f0   : > { %v2835_v30 = vpop.f32.mrf.mxu1  ;;  %v2805_v14 = vpop.f32.mrf.mxu0 }
 0x2f1   : > { %v4713_v0 = vadd.f32 %v2835_v30, %v2834_v7  ;;  %v4780_v30 = vpop.permute.xlu1 %1658 }
 0x2f2   : > { %v2837_v48 = vpop.f32.mrf.mxu1  ;;  %v2807_v51 = vpop.f32.mrf.mxu0 }
 0x2f4   : > { %v2838_v18 = vpop.f32.mrf.mxu1 }
 0x2f5   : > { %v4723_v26 = vadd.f32 %v2838_v18, %v2837_v48  ;;  %v4784_v18 = vpop.permute.xlu0 %1663 }
 0x2f6   : > { %v2840_v40 = vpop.f32.mrf.mxu1  ;;  %2412 = vmatmul.mubr.bf16.gmra.mxu1 %v3304_v43  ;;  %v2808_v43 = vpop.f32.mrf.mxu0 }
 0x2f7   : > { %2419 = vmatprep.mubr.bf16.mxu1 %v3305_v1 }
 0x2f8   : > { %v2841_v63 = vpop.f32.mrf.mxu1 }
 0x2f9   : > { %v4727_v34 = vadd.f32 %v2841_v63, %v2840_v40 }
 0x2fa   : > { %v2843_v19 = vpop.f32.mrf.mxu1 }
 0x2fc   : > { %v2844_v49 = vpop.f32.mrf.mxu1 }
 0x2fd   : > { %v4736_v62 = vadd.f32 %v2844_v49, %v2843_v19  ;;  %v2810_v19 = vpop.f32.mrf.mxu0  ;;  %v4788_v49 = vpop.permute.xlu1 %1728 }
 0x2fe   : > { %v2846_v32 = vpop.f32.mrf.mxu1  ;;  %2420 = vmatmul.mubr.bf16.gmra.mxu1 %v3307_v8 }
 0x300   : > { %v2847_v21 = vpop.f32.mrf.mxu1 }
 0x301   : > { %v4740_v31 = vadd.f32 %v2847_v21, %v2846_v32  ;;  %v4790_v21 = vpop.permute.xlu0 %1733 }
 0x302   : > { %v2849_v44 = vpop.f32.mrf.mxu1 }
 0x304   : > { %v2850_v12 = vpop.f32.mrf.mxu1 }
 0x305   : > { %v4744_v42 = vadd.f32 %v2850_v12, %v2849_v44  ;;  %v2811_v12 = vpop.f32.mrf.mxu0 }
 0x306   : > { %v2852_v22 = vpop.f32.mrf.mxu1  ;;  %v2812_v5 = vadd.f32 %v2811_v12, %v2810_v19 }
 0x308   : > { %v2853_v45 = vpop.f32.mrf.mxu1 }
 0x309   : > { %v4750_v53 = vadd.f32 %v2853_v45, %v2852_v22 }
 0x30a   : > { %v2855_v33 = vpop.f32.mrf.mxu1 }
 0x30c   : > { %v2856_v54 = vpop.f32.mrf.mxu1 }
 0x30d   : > { %v4754_v61 = vadd.f32 %v2856_v54, %v2855_v33  ;;  %v4794_v33 = vpop.permute.xlu1 %1648 }
 0x30e   : > { %v2858_v10 = vpop.f32.mrf.mxu1 }
 0x310   : > { %v2859_v46 = vpop.f32.mrf.mxu1 }
 0x311   : > { %v4758_v37 = vadd.f32 %v2859_v46, %v2858_v10  ;;  %v2813_v10 = vpop.f32.mrf.mxu0 }
 0x312   : > { %v2861_v29 = vpop.f32.mrf.mxu1 }
 0x314   : > { %v2862_v11 = vpop.f32.mrf.mxu1 }
 0x315   : > { %v4764_v56 = vadd.f32 %v2862_v11, %v2861_v29  ;;  %v4798_v29 = vpop.permute.xlu0 %1653 }
 0x316   : > { %v2864_v52 = vpop.f32.mrf.mxu1 }
 0x318   : > { %v2865_v36 = vpop.f32.mrf.mxu1 }
 0x319   : > { %v4768_v15 = vadd.f32 %v2865_v36, %v2864_v52  ;;  %v2814_v36 = vpop.f32.mrf.mxu0 }
 0x31a   : > { %v2867_v13 = vpop.f32.mrf.mxu1 }
 0x31c   : > { %v2868_v39 = vpop.f32.mrf.mxu1 }
 0x31d   : > { %v4772_v24 = vadd.f32 %v2868_v39, %v2867_v13  ;;  %v4802_v39 = vpop.permute.xlu1 %1718 }
 0x31e   : > { %v2870_v16 = vpop.f32.mrf.mxu1 }
 0x320   : > { %v2871_v25 = vpop.f32.mrf.mxu1 }
 0x321   : > { %v4778_v59 = vadd.f32 %v2871_v25, %v2870_v16  ;;  %v4804_v25 = vpop.permute.xlu0 %1723 }
 0x322   : > { %v2873_v35 = vpop.f32.mrf.mxu1 }
 0x323   : > { %5066 = vst [vmem:[#allocation16_spill] sm:$0xff] %v4778_v59 }
 0x324   : > { %v2874_v7 = vpop.f32.mrf.mxu1 }
 0x325   : > { %v4782_v48 = vadd.f32 %v2874_v7, %v2873_v35  ;;  %v2816_v7 = vpop.f32.mrf.mxu0  ;;  %v1644_v50 = vpop.permute.xlu0 %1643 }
 0x326   : > { %v2876_v1 = vpop.f32.mrf.mxu1 }
 0x327   : > { %5067 = vst [vmem:[#allocation18_spill] sm:$0xff] %v4782_v48 }
 0x328   : > { %v2877_v40 = vpop.f32.mrf.mxu1 }
 0x329   : > { %v4786_v63 = vadd.f32 %v2877_v40, %v2876_v1  ;;  %v4814_v28 = vpop.permute.xlu0 %1713 }
 0x32a   : > { %v2879_v8 = vpop.f32.mrf.mxu1 }
 0x32b   : > { %5068 = vst [vmem:[#allocation15_spill] sm:$0xff] %v4786_v63 }
 0x32c   : > { %v2880_v32 = vpop.f32.mrf.mxu1 }
 0x32d   : > { %v4792_v44 = vadd.f32 %v2880_v32, %v2879_v8  ;;  %v1639_v8 = vpop.permute.xlu1 %1638 }
 0x32e   : > { %v2882_v22 = vpop.f32.mrf.mxu1 }
 0x32f   : > { %5069 = vst [vmem:[#allocation17_spill] sm:$0xff] %v4792_v44 }
 0x330   : > { %v2883_v45 = vpop.f32.mrf.mxu1 }
 0x331   : > { %v4796_v54 = vadd.f32 %v2883_v45, %v2882_v22  ;;  %v2817_v22 = vpop.f32.mrf.mxu0  ;;  %v4812_v17 = vpop.permute.xlu1 %1708 }
 0x332   : > { %v2885_v46 = vpop.f32.mrf.mxu1 }
 0x333   : > { %5070 = vst [vmem:[#allocation20_spill] sm:$0xff] %v4796_v54  ;;  %v2819_v41 = vpop.f32.mrf.mxu0 }
 0x334   : > { %v2886_v11 = vpop.f32.mrf.mxu1 }
 0x335   : > { %v4800_v52 = vadd.f32 %v2886_v11, %v2885_v46 }
 0x336   : > { %v2888_v13 = vpop.f32.mrf.mxu1 }
 0x337   : > { %5071 = vst [vmem:[#allocation19_spill] sm:$0xff] %v4800_v52 }
 0x338   : > { %v2889_v16 = vpop.f32.mrf.mxu1 }
 0x339   : > { %v4806_v35 = vadd.f32 %v2889_v16, %v2888_v13  ;;  %v2806_v16 = vadd.f32 %v2805_v14, %v2804_v38  ;;  %v2815_v14 = vadd.f32 %v2814_v36, %v2813_v10 }
 0x33a   : > { %v2891_v1 = vpop.f32.mrf.mxu1 }
 0x33b   : > { %5072 = vst [vmem:[#allocation21_spill] sm:$0xff] %v4806_v35  ;;  %v2820_v35 = vpop.f32.mrf.mxu0 }
 0x33c   : > { %v2892_v40 = vpop.f32.mrf.mxu1  ;;  %v2821_v12 = vadd.f32 %v2820_v35, %v2819_v41 }
 0x33d   : > { %v4808_v32 = vadd.f32 %v2892_v40, %v2891_v1  ;;  %v1629_v40 = vpop.permute.xlu1 %1628  ;;  %v2822_v4 = vpop.f32.mrf.mxu0 }
 0x33e   : > { %v2894_v45 = vpop.f32.mrf.mxu1  ;;  %v2141_v44 = vadd.f32 %v2806_v16, %v1629_v40 }
 0x33f   : > { %5073 = vst [vmem:[#allocation22_spill] sm:$0xff] %v4808_v32  ;;  %v2809_v32 = vadd.f32 %v2808_v43, %v2807_v51  ;;  %v2823_v59 = vpop.f32.mrf.mxu0 }
 0x340   : > { %v2895_v46 = vpop.f32.mrf.mxu1 }
 0x341   : > { %v4810_v11 = vadd.f32 %v2895_v46, %v2894_v45  ;;  %v1634_v46 = vpop.permute.xlu0 %1633  ;;  %v2825_v51 = vpop.f32.mrf.mxu0 }
 0x342   : > { %v2897_v27 = vpop.f32.mrf.mxu1  ;;  %v2144_v57 = vadd.f32 %v2809_v32, %v1634_v46 }
 0x343   : > { %5074 = vst [vmem:[#allocation23_spill] sm:$0xff] %v4810_v11 }
 0x344   : > { %v2898_v52 = vpop.f32.mrf.mxu1 }
 0x345   : > { %v4816_v13 = vadd.f32 %v2898_v52, %v2897_v27 }
 0x346   : > { %v2916_v54 = vpop.f32.mrf.mxu1 }
 0x347   : > { %5075 = vst [vmem:[#allocation24_spill] sm:$0xff] %v4816_v13  ;;  %v2149_v13 = vadd.f32 %v2812_v5, %v1639_v8 }
 0x348   : > { %v2917_v1 = vpop.f32.mrf.mxu1 }
 0x349   : > { %v2918_v23 = vadd.f32 %v2917_v1, %v2916_v54  ;;  %v2152_v1 = vadd.f32 %v2815_v14, %v1644_v50  ;;  %v2160_v50 = vadd.f32 %v2821_v12, %v4798_v29 }
 0x34a   : > { %v2919_v45 = vpop.f32.mrf.mxu1 }
 0x34b   : > { %v2302_v11 = vadd.f32 %v2918_v23, %v2141_v44  ;;  %v2818_v23 = vadd.f32 %v2817_v22, %v2816_v7  ;;  %v2826_v44 = vpop.f32.mrf.mxu0  ;;  %v2824_v22 = vadd.f32 %v2823_v59, %v2822_v4 }
 0x34c   : > { %v2920_v63 = vpop.f32.mrf.mxu1  ;;  %v2827_v35 = vadd.f32 %v2826_v44, %v2825_v51 }
 0x34d   : > { %v2921_v48 = vadd.f32 %v2920_v63, %v2919_v45  ;;  %3468 = vtanh.f32 %v2302_v11  ;;  %v2828_v10 = vpop.f32.mrf.mxu0 }
 0x34e   : > { %v2922_v47 = vpop.f32.mrf.mxu1  ;;  %v2168_v4 = vadd.f32 %v2827_v35, %v4784_v18 }
 0x34f   : > { %v2305_v27 = vadd.f32 %v2921_v48, %v2144_v57  ;;  %v2157_v48 = vadd.f32 %v2818_v23, %v4794_v33 }
 0x350   : > { %v2923_v38 = vpop.f32.mrf.mxu1 }
 0x351   : > { %3470 = vtanh.f32 %v2305_v27  ;;  %v2924_v52 = vadd.f32 %v2923_v38, %v2922_v47  ;;  %v2165_v38 = vadd.f32 %v2824_v22, %v4780_v30 }
 0x352   : > { %v2925_v43 = vpop.f32.mrf.mxu1 }
 0x353   : > { %v2310_v54 = vadd.f32 %v2924_v52, %v2149_v13  ;;  %v2829_v13 = vpop.f32.mrf.mxu0 }
 0x354   : > { %v2926_v16 = vpop.f32.mrf.mxu1 }
 0x355   : > { %v2927_v40 = vadd.f32 %v2926_v16, %v2925_v43  ;;  %3472 = vtanh.f32 %v2310_v54  ;;  %v2831_v14 = vpop.f32.mrf.mxu0 }
 0x356   : > { %v2928_v32 = vpop.f32.mrf.mxu1 }
 0x357   : > { %v2313_v63 = vadd.f32 %v2927_v40, %v2152_v1  ;;  %v2830_v1 = vadd.f32 %v2829_v13, %v2828_v10  ;;  %v2832_v40 = vpop.f32.mrf.mxu0 }
 0x358   : > { %v2929_v19 = vpop.f32.mrf.mxu1  ;;  %v2833_v44 = vadd.f32 %v2832_v40, %v2831_v14 }
 0x359   : > { %3474 = vtanh.f32 %v2313_v63  ;;  %v2930_v57 = vadd.f32 %v2929_v19, %v2928_v32  ;;  %v2173_v19 = vadd.f32 %v2830_v1, %v4766_v60  ;;  %v2181_v60 = vadd.f32 %v4713_v0, %v4752_v9 }
 0x35a   : > { %v2931_v47 = vpop.f32.mrf.mxu1  ;;  %v4819_v8 = vpop.eup %3468  ;;  %v2176_v10 = vadd.f32 %v2833_v44, %v4770_v2  ;;  %v2184_v2 = vadd.f32 %v4723_v26, %v4756_v55  ;;  %v2189_v26 = vadd.f32 %v4727_v34, %v4738_v20  ;;  %v2197_v20 = vadd.f32 %v4740_v31, %v4721_v58 }
 0x35b   : > { %v2318_v5 = vadd.f32 %v2930_v57, %v2157_v48  ;;  %v2205_v31 = vadd.f32 %v4750_v53, %v4812_v17  ;;  %v2213_v53 = vadd.f32 %v4758_v37, %v4802_v39  ;;  %v2221_v39 = vadd.f32 %v4768_v15, %v4788_v49 }
 0x35c   : > { %v2932_v36 = vpop.f32.mrf.mxu1 }
 0x35d   : > { %v2933_v11 = vadd.f32 %v2932_v36, %v2931_v47  ;;  %3476 = vtanh.f32 %v2318_v5 }
 0x35e   : > { %v4822_v7 = vpop.eup %3470  ;;  %v2934_v45 = vpop.f32.mrf.mxu1 }
 0x35f   : > { %v2321_v46 = vadd.f32 %v2933_v11, %v2160_v50  ;;  %v2460_v41 = vpack.c.bf16 %v4822_v7, %v4819_v8 }
 0x360   : > { %v2935_v33 = vpop.f32.mrf.mxu1 }
 0x361   : > { %3478 = vtanh.f32 %v2321_v46  ;;  %v2936_v27 = vadd.f32 %v2935_v33, %v2934_v45 }
 0x362   : > { %v2937_v52 = vpop.f32.mrf.mxu1  ;;  %v4827_v54 = vpop.eup %3472 }
 0x363   : > { %v2326_v29 = vadd.f32 %v2936_v27, %v2165_v38 }
 0x364   : > { %v2938_v43 = vpop.f32.mrf.mxu1 }
 0x365   : > { %v2939_v59 = vadd.f32 %v2938_v43, %v2937_v52  ;;  %3480 = vtanh.f32 %v2326_v29  ;;  %v4853_v52 = vld.sshfl [vmem:[%s5017_s5] sm:$0x33 pattern:$0x76325410] }
 0x366   : > { %v4830_v16 = vpop.eup %3474  ;;  %v2940_v23 = vpop.f32.mrf.mxu1  ;;  %v2491_v29 = vcombine.high %v4853_v52, %v4853_v52 }
 0x367   : > { %v2329_v32 = vadd.f32 %v2939_v59, %v2168_v4  ;;  %v2461_v51 = vpack.c.bf16 %v4830_v16, %v4827_v54  ;;  %v2481_v16 = vpop.permute.xlu1 %2480 }
 0x368   : > { %v2941_v30 = vpop.f32.mrf.mxu1  ;;  %2526 = vmatprep.mubr.bf16.mxu0 %v2491_v29 }
 0x369   : > { %3482 = vtanh.f32 %v2329_v32  ;;  %v2942_v63 = vadd.f32 %v2941_v30, %v2940_v23  ;;  %v2192_v23 = vadd.f32 %v4736_v62, %v4742_v3  ;;  %v2200_v62 = vadd.f32 %v4744_v42, %v4725_v6 }
 0x36a   : > { %v2943_v12 = vpop.f32.mrf.mxu1  ;;  %v4835_v48 = vpop.eup %3476  ;;  %v2208_v6 = vadd.f32 %v4754_v61, %v4814_v28  ;;  %v2216_v28 = vadd.f32 %v4764_v56, %v4804_v25  ;;  %v2224_v56 = vadd.f32 %v4772_v24, %v4790_v21  ;;  %v5078_v24 = vld [vmem:[#allocation13_spill] sm:$0xff]  ;;  %v5079_v21 = vld [vmem:[#allocation18_spill] sm:$0xff] }
 0x36b   : > { %v2334_v57 = vadd.f32 %v2942_v63, %v2173_v19 }
 0x36c   : > { %v2944_v18 = vpop.f32.mrf.mxu1 }
 0x36d   : > { %v2945_v47 = vadd.f32 %v2944_v18, %v2943_v12  ;;  %3484 = vtanh.f32 %v2334_v57 }
 0x36e   : > { %v4838_v5 = vpop.eup %3478  ;;  %v2946_v36 = vpop.f32.mrf.mxu1 }
 0x36f   : > { %v2337_v50 = vadd.f32 %v2945_v47, %v2176_v10  ;;  %v2462_v11 = vpack.c.bf16 %v4838_v5, %v4835_v48 }
 0x370   : > { %v2947_v22 = vpop.f32.mrf.mxu1 }
 0x371   : > { %3486 = vtanh.f32 %v2337_v50  ;;  %v2948_v13 = vadd.f32 %v2947_v22, %v2946_v36 }
 0x372   : > { %v2949_v45 = vpop.f32.mrf.mxu1  ;;  %v4844_v35 = vpop.eup %3480 }
 0x373   : > { %v2342_v46 = vadd.f32 %v2948_v13, %v2181_v60 }
 0x374   : > { %v2950_v33 = vpop.f32.mrf.mxu1 }
 0x375   : > { %v2951_v27 = vadd.f32 %v2950_v33, %v2949_v45  ;;  %3488 = vtanh.f32 %v2342_v46 }
 0x376   : > { %v4848_v38 = vpop.eup %3482  ;;  %v2952_v14 = vpop.f32.mrf.mxu1 }
 0x377   : > { %v2345_v0 = vadd.f32 %v2951_v27, %v2184_v2  ;;  %v2463_v9 = vpack.c.bf16 %v4848_v38, %v4844_v35 }
 0x378   : > { %v2953_v43 = vpop.f32.mrf.mxu1 }
 0x379   : > { %3490 = vtanh.f32 %v2345_v0  ;;  %v2954_v55 = vadd.f32 %v2953_v43, %v2952_v14 }
 0x37a   : > { %v2955_v4 = vpop.f32.mrf.mxu1  ;;  %v4861_v40 = vpop.eup %3484 }
 0x37b   : > { %v2350_v59 = vadd.f32 %v2954_v55, %v2189_v26 }
 0x37c   : > { %v2956_v1 = vpop.f32.mrf.mxu1 }
 0x37d   : > { %v2957_v32 = vadd.f32 %v2956_v1, %v2955_v4  ;;  %3492 = vtanh.f32 %v2350_v59 }
 0x37e   : > { %v4865_v30 = vpop.eup %3486  ;;  %v2958_v44 = vpop.f32.mrf.mxu1 }
 0x37f   : > { %v2353_v63 = vadd.f32 %v2957_v32, %v2192_v23  ;;  %v2464_v19 = vpack.c.bf16 %v4865_v30, %v4861_v40 }
 0x380   : > { %v2959_v34 = vpop.f32.mrf.mxu1 }
 0x381   : > { %3494 = vtanh.f32 %v2353_v63  ;;  %v2960_v12 = vadd.f32 %v2959_v34, %v2958_v44 }
 0x382   : > { %v2961_v57 = vpop.f32.mrf.mxu1  ;;  %v4871_v47 = vpop.eup %3488 }
 0x383   : > { %v2358_v18 = vadd.f32 %v2960_v12, %v2197_v20 }
 0x384   : > { %v2962_v10 = vpop.f32.mrf.mxu1 }
 0x385   : > { %v2963_v3 = vadd.f32 %v2962_v10, %v2961_v57  ;;  %3496 = vtanh.f32 %v2358_v18 }
 0x386   : > { %v4875_v36 = vpop.eup %3490  ;;  %v2964_v50 = vpop.f32.mrf.mxu1 }
 0x387   : > { %v2361_v22 = vadd.f32 %v2963_v3, %v2200_v62  ;;  %v2465_v60 = vpack.c.bf16 %v4875_v36, %v4871_v47 }
 0x388   : > { %v2965_v58 = vpop.f32.mrf.mxu1 }
 0x389   : > { %3498 = vtanh.f32 %v2361_v22  ;;  %v2966_v13 = vadd.f32 %v2965_v58, %v2964_v50  ;;  %v5076_v50 = vld [vmem:[#allocation11_spill] sm:$0xff]  ;;  %v5077_v22 = vld [vmem:[#allocation16_spill] sm:$0xff] }
 0x38a   : > { %v2967_v45 = vpop.f32.mrf.mxu1  ;;  %v4881_v2 = vpop.eup %3492  ;;  %v2229_v58 = vadd.f32 %v5077_v22, %v5076_v50 }
 0x38b   : > { %v2366_v46 = vadd.f32 %v2966_v13, %v2205_v31 }
 0x38c   : > { %v2968_v33 = vpop.f32.mrf.mxu1 }
 0x38d   : > { %v2969_v42 = vadd.f32 %v2968_v33, %v2967_v45  ;;  %3500 = vtanh.f32 %v2366_v46  ;;  %v2232_v33 = vadd.f32 %v5079_v21, %v5078_v24  ;;  %v5087_v24 = vld [vmem:[#allocation19_spill] sm:$0xff] }
 0x38e   : > { %v4885_v27 = vpop.eup %3494  ;;  %v2970_v14 = vpop.f32.mrf.mxu1 }
 0x38f   : > { %v2369_v0 = vadd.f32 %v2969_v42, %v2208_v6  ;;  %v2466_v29 = vpack.c.bf16 %v4885_v27, %v4881_v2 }
 0x390   : > { %v2971_v17 = vpop.f32.mrf.mxu1 }
 0x391   : > { %3502 = vtanh.f32 %v2369_v0  ;;  %v2972_v43 = vadd.f32 %v2971_v17, %v2970_v14 }
 0x392   : > { %v2973_v26 = vpop.f32.mrf.mxu1  ;;  %v4891_v59 = vpop.eup %3496 }
 0x393   : > { %v2374_v55 = vadd.f32 %v2972_v43, %v2213_v53 }
 0x394   : > { %v2974_v4 = vpop.f32.mrf.mxu1 }
 0x395   : > { %v2975_v61 = vadd.f32 %v2974_v4, %v2973_v26  ;;  %3504 = vtanh.f32 %v2374_v55  ;;  %v5080_v26 = vld [vmem:[#allocation12_spill] sm:$0xff]  ;;  %v5081_v55 = vld [vmem:[#allocation15_spill] sm:$0xff] }
 0x396   : > { %v4895_v1 = vpop.eup %3498  ;;  %v2976_v23 = vpop.f32.mrf.mxu1  ;;  %v2237_v4 = vadd.f32 %v5081_v55, %v5080_v26  ;;  %v5088_v55 = vld [vmem:[#allocation6_spill] sm:$0xff] }
 0x397   : > { %v2377_v32 = vadd.f32 %v2975_v61, %v2216_v28  ;;  %v2467_v44 = vpack.c.bf16 %v4895_v1, %v4891_v59 }
 0x398   : > { %v2977_v37 = vpop.f32.mrf.mxu1 }
 0x399   : > { %3506 = vtanh.f32 %v2377_v32  ;;  %v2978_v63 = vadd.f32 %v2977_v37, %v2976_v23  ;;  %v5082_v37 = vld [vmem:[#allocation14_spill] sm:$0xff] }
 0x39a   : > { %v2979_v34 = vpop.f32.mrf.mxu1  ;;  %v4901_v57 = vpop.eup %3500 }
 0x39b   : > { %v2382_v20 = vadd.f32 %v2978_v63, %v2221_v39  ;;  %v5083_v39 = vld [vmem:[#allocation17_spill] sm:$0xff] }
 0x39c   : > { %v2980_v12 = vpop.f32.mrf.mxu1  ;;  %v2240_v63 = vadd.f32 %v5083_v39, %v5082_v37  ;;  %v5090_v39 = vld [vmem:[#allocation10_spill] sm:$0xff] }
 0x39d   : > { %v2981_v25 = vadd.f32 %v2980_v12, %v2979_v34  ;;  %3508 = vtanh.f32 %v2382_v20 }
 0x39e   : > { %v4905_v18 = vpop.eup %3502  ;;  %v2982_v10 = vpop.f32.mrf.mxu1 }
 0x39f   : > { %v2385_v62 = vadd.f32 %v2981_v25, %v2224_v56  ;;  %v2468_v3 = vpack.c.bf16 %v4905_v18, %v4901_v57 }
 0x3a0   : > { %v2983_v15 = vpop.f32.mrf.mxu1 }
 0x3a1   : > { %3510 = vtanh.f32 %v2385_v62  ;;  %v2984_v49 = vadd.f32 %v2983_v15, %v2982_v10  ;;  %v5084_v15 = vld [vmem:[#allocation7_spill] sm:$0xff] }
 0x3a2   : > { %v2985_v31 = vpop.f32.mrf.mxu1  ;;  %v4911_v46 = vpop.eup %3504 }
 0x3a3   : > { %v2390_v13 = vadd.f32 %v2984_v49, %v2229_v58  ;;  %v5085_v49 = vld [vmem:[#allocation20_spill] sm:$0xff] }
 0x3a4   : > { %v2986_v45 = vpop.f32.mrf.mxu1  ;;  %v2245_v50 = vadd.f32 %v5085_v49, %v5084_v15 }
 0x3a5   : > { %v2987_v6 = vadd.f32 %v2986_v45, %v2985_v31  ;;  %3512 = vtanh.f32 %v2390_v13  ;;  %v5086_v45 = vld [vmem:[#allocation9_spill] sm:$0xff] }
 0x3a6   : > { %v4915_v42 = vpop.eup %3506  ;;  %v2988_v14 = vpop.f32.mrf.mxu1  ;;  %v2248_v21 = vadd.f32 %v5087_v24, %v5086_v45 }
 0x3a7   : > { %v2393_v0 = vadd.f32 %v2987_v6, %v2232_v33  ;;  %v2469_v17 = vpack.c.bf16 %v4915_v42, %v4911_v46 }
 0x3a8   : > { %v2989_v53 = vpop.f32.mrf.mxu1 }
 0x3a9   : > { %3514 = vtanh.f32 %v2393_v0  ;;  %v2990_v43 = vadd.f32 %v2989_v53, %v2988_v14 }
 0x3aa   : > { %v2991_v28 = vpop.f32.mrf.mxu1  ;;  %v4921_v32 = vpop.eup %3508 }
 0x3ab   : > { %v2398_v61 = vadd.f32 %v2990_v43, %v2237_v4  ;;  %v5089_v4 = vld [vmem:[#allocation21_spill] sm:$0xff] }
 0x3ac   : > { %v2992_v23 = vpop.f32.mrf.mxu1 }
 0x3ad   : > { %v2993_v34 = vadd.f32 %v2992_v23, %v2991_v28  ;;  %3516 = vtanh.f32 %v2398_v61  ;;  %v2253_v28 = vadd.f32 %v5089_v4, %v5088_v55 }
 0x3ae   : > { %v4925_v20 = vpop.eup %3510  ;;  %v2994_v12 = vpop.f32.mrf.mxu1 }
 0x3af   : > { %v2401_v56 = vadd.f32 %v2993_v34, %v2240_v63  ;;  %v2470_v25 = vpack.c.bf16 %v4925_v20, %v4921_v32  ;;  %v5091_v63 = vld [vmem:[#allocation22_spill] sm:$0xff] }
 0x3b0   : > { %v2995_v10 = vpop.f32.mrf.mxu1  ;;  %v2256_v34 = vadd.f32 %v5091_v63, %v5090_v39 }
 0x3b1   : > { %3518 = vtanh.f32 %v2401_v56  ;;  %v2996_v62 = vadd.f32 %v2995_v10, %v2994_v12 }
 0x3b2   : > { %v2997_v22 = vpop.f32.mrf.mxu1  ;;  %v3513_v13 = vpop.eup %3512 }
 0x3b3   : > { %v2406_v58 = vadd.f32 %v2996_v62, %v2245_v50  ;;  %v5092_v50 = vld [vmem:[#allocation5_spill] sm:$0xff] }
 0x3b4   : > { %v2998_v31 = vpop.f32.mrf.mxu1 }
 0x3b5   : > { %v2999_v33 = vadd.f32 %v2998_v31, %v2997_v22  ;;  %3520 = vtanh.f32 %v2406_v58  ;;  %v5093_v22 = vld [vmem:[#allocation23_spill] sm:$0xff] }
 0x3b6   : > { %v3515_v6 = vpop.eup %3514  ;;  %v3000_v14 = vpop.f32.mrf.mxu1  ;;  %v2261_v58 = vadd.f32 %v5093_v22, %v5092_v50 }
 0x3b7   : > { %v2409_v0 = vadd.f32 %v2999_v33, %v2248_v21  ;;  %v2471_v53 = vpack.c.bf16 %v3515_v6, %v3513_v13  ;;  %v5094_v21 = vld [vmem:[#allocation8_spill] sm:$0xff] }
 0x3b8   : > { %v3001_v43 = vpop.f32.mrf.mxu1  ;;  %v5095_v33 = vld [vmem:[#allocation24_spill] sm:$0xff] }
 0x3b9   : > { %3522 = vtanh.f32 %v2409_v0  ;;  %v3002_v26 = vadd.f32 %v3001_v43, %v3000_v14  ;;  %v2264_v6 = vadd.f32 %v5095_v33, %v5094_v21 }
 0x3ba   : > { %v3003_v61 = vpop.f32.mrf.mxu1  ;;  %v3517_v37 = vpop.eup %3516 }
 0x3bb   : > { %v2414_v23 = vadd.f32 %v3002_v26, %v2253_v28 }
 0x3bc   : > { %v3004_v32 = vpop.f32.mrf.mxu1 }
 0x3bd   : > { %v3005_v20 = vadd.f32 %v3004_v32, %v3003_v61  ;;  %3524 = vtanh.f32 %v2414_v23 }
 0x3be   : > { %v3519_v12 = vpop.eup %3518  ;;  %v3006_v56 = vpop.f32.mrf.mxu1 }
 0x3bf   : > { %v2417_v10 = vadd.f32 %v3005_v20, %v2256_v34  ;;  %v2472_v62 = vpack.c.bf16 %v3519_v12, %v3517_v37 }
 0x3c0   : > { %v3007_v15 = vpop.f32.mrf.mxu1 }
 0x3c1   : > { %3526 = vtanh.f32 %v2417_v10  ;;  %v3008_v49 = vadd.f32 %v3007_v15, %v3006_v56 }
 0x3c2   : > { %v3009_v31 = vpop.f32.mrf.mxu1  ;;  %v3521_v24 = vpop.eup %3520 }
 0x3c3   : > { %v2422_v13 = vadd.f32 %v3008_v49, %v2261_v58 }
 0x3c4   : > { %v3010_v45 = vpop.f32.mrf.mxu1 }
 0x3c5   : > { %v3011_v14 = vadd.f32 %v3010_v45, %v3009_v31  ;;  %3528 = vtanh.f32 %v2422_v13 }
 0x3c6   : > { %v3523_v0 = vpop.eup %3522 }
 0x3c7   : > { %v2425_v43 = vadd.f32 %v3011_v14, %v2264_v6  ;;  %v2473_v26 = vpack.c.bf16 %v3523_v0, %v3521_v24 }
 0x3c9   : > { %3530 = vtanh.f32 %v2425_v43 }
 0x3ca   : > { %v3525_v55 = vpop.eup %3524 }
 0x3ce   : > { %v3527_v4 = vpop.eup %3526 }
 0x3cf   : > { %v2474_v28 = vpack.c.bf16 %v3527_v4, %v3525_v55 }
 0x3d2   : > { %v3529_v61 = vpop.eup %3528 }
 0x3d6   : > { %v3531_v23 = vpop.eup %3530 }
 0x3d7   : > { %v2475_v32 = vpack.c.bf16 %v3531_v23, %v3529_v61 }
 0x3d9   : > { %3012 = vmatprep.subr.bf16.mxu0 %v2475_v32 }
 0x3da   : > { %3013 = vmatpush3.bf16.msra.mxu0 %v2467_v44 }
 0x3db   : > { %3014 = vmatprep.subr.bf16.mxu0 %v2474_v28 }
 0x3de   : > { %3015 = vmatpush3.bf16.msra.mxu0 %v2466_v29 }
 0x3df   : > { %3016 = vmatprep.subr.bf16.mxu0 %v2473_v26 }
 0x3e2   : > { %3017 = vmatpush3.bf16.msra.mxu0 %v2465_v60 }
 0x3e3   : > { %3018 = vmatprep.subr.bf16.mxu0 %v2472_v62 }
 0x3e6   : > { %3019 = vmatpush3.bf16.msra.mxu0 %v2464_v19 }
 0x3e7   : > { %3020 = vmatprep.subr.bf16.mxu0 %v2471_v53 }
 0x3ea   : > { %3021 = vmatpush3.bf16.msra.mxu0 %v2463_v9 }
 0x3eb   : > { %3022 = vmatprep.subr.bf16.mxu0 %v2470_v25 }
 0x3ee   : > { %3023 = vmatpush3.bf16.msra.mxu0 %v2462_v11 }
 0x3ef   : > { %3024 = vmatprep.subr.bf16.mxu0 %v2469_v17 }
 0x3f2   : > { %3025 = vmatpush3.bf16.msra.mxu0 %v2461_v51 }
 0x3f3   : > { %3026 = vmatprep.subr.bf16.mxu0 %v2468_v3 }
 0x3f6   : > { %3027 = vmatpush3.bf16.msra.mxu0 %v2460_v41 }
 0x3f9   : > { %2527 = vmatmul.mubr.bf16.vlgmr.msra.gmra.mxu0 %v4853_v52 }
 0x4b9   : > { %v3028_v48 = vpop.f32.mrf.mxu0 }
 0x4bb   : > { %v3029_v5 = vpop.f32.mrf.mxu0 }
 0x4bc   : > { %v3030_v54 = vadd.f32 %v3029_v5, %v3028_v48 }
 0x4bd   : > { %v3031_v51 = vpop.f32.mrf.mxu0 }
 0x4be   : > { %v2529_v11 = vadd.f32 %v3030_v54, %v2481_v16 }
 0x4bf   : > { %v3032_v8 = vpop.f32.mrf.mxu0 }
 0x4c0   : > { %2534 = vst [vmem:[%s272_s17] sm:$0xf] %v2529_v11 }
 0x4c1   : > { %3545 = shalt.err (!%p3542_p3)
}
 0x4c2   : > { %s3546_s9 = scalar_lea.hbm %s4977_s21, 64  ;;  %s3550_s15 = scalar_lea.hbm %s5019_s7, 128 }
 0x4c3   : > { %p3547_p4 = scmp.ne.s32.totalorder %s4977_s21, %s3546_s9  ;;  %p3551_p9 = scmp.lt.s32.totalorder %s4977_s21, %s5019_s7 }
 0x4c4   : > { %p3552_p10 = scmp.lt.s32.totalorder %s3550_s15, %s3546_s9 }
 0x4c5   : > { %p3548_p7 = pnand %p3547_p4, %p3674_p5 }
 0x4c6   : > { %p3553_p11 = por %p3552_p10, %p3551_p9 }
 0x4c7   : > { %p3549_p8 = pneg %p3548_p7 }
 0x4c9   : > { %p3554_p12 = pnand %p3553_p11, %p3549_p8 }
 0x4cb   : > { %3557 = shalt.err (!%p3554_p12)
}
 0x4cc   : > { %3138 = dma.vmem_to_hbm [thread:$0]  (%p3674_p5), %s2550_s18, 64, %s4977_s21, %s2536_s22  }
 0x4cd PF: > { %p3144_p13 = scmp.ge.s32.totalorder %s3592_s27, 2  ;;  %s2561_s19 = sand.u32 1, %s3580_s24  }
 0x4ce   : > { %s2562_s20 = scalar_lea.sflag [#allocation3], %s2561_s19 }
 0x4cf   : > { %p3141_p0 = pnand %p3144_p13, %p3678_p6 }
 0x4d1   : > { %p3142_p1 = pneg %p3141_p0 }
 0x4d3   : > { %3575 = dma.done.wait (%p3142_p1), %s2562_s20, 64  }
 0x4d4   : > { %3577 = vsyncadd (%p3142_p1), %s2562_s20, 4294967232  ;;  %p17_p2 = scmp.ge.s32.totalorder %s3661_s30, 4   ;;  %s5096_s24 = smov %s3584_s25 }
 0x4d5   : > { %s5097_s25 = smov %s3588_s26  ;;  %s5098_s26 = smov %s3672_s10 }
 0x4d6   : > { %s5099_s27 = smov %s3661_s30  ;;  %19 = sbr.rel (!%p17_p2) target bundleno = 3 (0x3), region = 83 }
 0x4db   :  { %2567 = vsyncpa [#allocation3], 1 }
 0x4dc   :  { %2569 = vsyncpa [#allocation3 + $0x1], 1 }

</bundles_post_ra>
